<compile_context>
chip_gen: v7x
topology: tpu7x:2x2x1
jax: 0.10.0
libtpu: 0.0.40
codegen_flags: <defaults>
</compile_context>

<pallas_src>
import functools
import math

import jax
import jax.numpy as jnp
from jax.experimental import pallas as pl
from jax.experimental.pallas import tpu as pltpu


# Toggle for single-buffered resident weights (pl.Buffered(1)); flipped off and
# the forward retried if the installed Pallas version rejects pipeline_mode.
_SINGLE_BUFFER_RESIDENT = [True]


def _resident_spec(shape, index_map):
    """BlockSpec for blocks whose index never changes (weights are fetched once);
    Buffered(1) avoids allocating a useless second double-buffer copy."""
    if _SINGLE_BUFFER_RESIDENT[0]:
        try:
            return pl.BlockSpec(shape, index_map, pipeline_mode=pl.Buffered(1))
        except Exception:
            _SINGLE_BUFFER_RESIDENT[0] = False
    return pl.BlockSpec(shape, index_map)


def _vmem_budget_bytes():
    """Per-generation VMEM limit: use most of the 128 MiB on v5e/v6e, leave
    headroom under v7x's 64 MiB."""
    cap = 64 * 1024 * 1024
    try:
        info = pltpu.get_tpu_info()
        cap = int(getattr(info, "vmem_capacity_bytes", cap) or cap)
    except Exception:
        pass
    if cap >= 96 * 1024 * 1024:          # v5e / v6e (128 MiB physical)
        return 112 * 1024 * 1024
    return 56 * 1024 * 1024              # v7x (64 MiB physical)


def _layernorm(x, eps=1e-6):
    mean = jnp.mean(x, axis=-1, keepdims=True)
    var = jnp.mean((x - mean) ** 2, axis=-1, keepdims=True)
    return (x - mean) * jax.lax.rsqrt(var + eps)


def _gelu_tanh(x):
    c = 0.7978845608028654  # sqrt(2/pi)
    return 0.5 * x * (1.0 + jnp.tanh(c * (x + 0.044715 * x * x * x)))


def _tile(n, target):
    t = min(target, n)
    assert n % t == 0, f"size {n} not divisible by tile {t}"
    return t
    # TODO(synk): production SD3 sequence lengths (e.g. 4096 + 154/333) are not
    # tile multiples; ragged support needs padded tiles with -inf key masking.


# --------------------------------------------------------------------------
# Kernel 1: modulated LayerNorm + per-group projection, lane-dense (ts, D)
# outputs in (B, S, D) layout.
# --------------------------------------------------------------------------
def _ln_proj_kernel(x_ref, scale_ref, shift_ref, w_ref, b_ref, *out_refs):
    x = x_ref[0].astype(jnp.float32)                          # (ts, D)
    xn = _layernorm(x) * (1.0 + scale_ref[0]) + shift_ref[0]
    xn = xn.astype(jnp.bfloat16)
    for g, o_ref in enumerate(out_refs):
        y = jnp.dot(xn, w_ref[g], preferred_element_type=jnp.float32) + b_ref[g]
        o_ref[0] = y.astype(o_ref.dtype)                      # single lane-dense store


def _ln_proj_call(x, scale, shift, w, b, *, row_tile, vmem_limit):
    B, S, D = x.shape
    n_out = w.shape[0]
    ts = row_tile
    return pl.pallas_call(
        _ln_proj_kernel,
        out_shape=tuple(jax.ShapeDtypeStruct((B, S, D), jnp.bfloat16)
                        for _ in range(n_out)),
        grid=(B, S // ts),
        in_specs=[
            pl.BlockSpec((1, ts, D), lambda bi, i: (bi, i, 0)),
            pl.BlockSpec((1, 1, D), lambda bi, i: (bi, 0, 0)),
            pl.BlockSpec((1, 1, D), lambda bi, i: (bi, 0, 0)),
            _resident_spec((n_out, D, D), lambda bi, i: (0, 0, 0)),   # weights resident
            _resident_spec((n_out, 1, D), lambda bi, i: (0, 0, 0)),   # biases resident
        ],
        out_specs=tuple(pl.BlockSpec((1, ts, D), lambda bi, i: (bi, i, 0))
                        for _ in range(n_out)),
        compiler_params=pltpu.CompilerParams(
            dimension_semantics=("parallel", "parallel"),
            vmem_limit_bytes=vmem_limit),
    )(x, scale, shift, w, b)


# --------------------------------------------------------------------------
# Kernel 2: flash attention (online softmax), heads-batched dot_general,
# dense (H, tq) running stats, single lane-dense (tq, D) output store.
# --------------------------------------------------------------------------
def _flash_attn_kernel(q_ref, k_ref, v_ref, o_ref, m_sc, l_sc, acc_sc):
    j = pl.program_id(2)

    @pl.when(j == 0)
    def _():
        m_sc[...] = jnp.full(m_sc.shape, -jnp.inf, dtype=m_sc.dtype)
        l_sc[...] = jnp.zeros(l_sc.shape, l_sc.dtype)
        acc_sc[...] = jnp.zeros(acc_sc.shape, acc_sc.dtype)

    q = q_ref[0]                                              # (H, tq, hd) bf16, pre-scaled
    k = k_ref[0]                                              # (H, tk, hd) bf16
    v = v_ref[0]                                              # (H, tk, hd) bf16

    s = jax.lax.dot_general(q, k, (((2,), (2,)), ((0,), (0,))),
                            preferred_element_type=jnp.float32)        # (H, tq, tk)

    m_prev = m_sc[...]                                        # (H, tq) dense
    m_new = jnp.maximum(m_prev, jnp.max(s, axis=-1))          # (H, tq)
    alpha = jnp.exp(m_prev - m_new)                           # (H, tq)
    p = jnp.exp(s - m_new[..., None])                         # (H, tq, tk)
    l_sc[...] = alpha * l_sc[...] + jnp.sum(p, axis=-1)
    pv = jax.lax.dot_general(p.astype(jnp.bfloat16), v,
                             (((2,), (1,)), ((0,), (0,))),
                             preferred_element_type=jnp.float32)       # (H, tq, hd)
    acc_sc[...] = alpha[..., None] * acc_sc[...] + pv
    m_sc[...] = m_new

    @pl.when(j == pl.num_programs(2) - 1)
    def _():
        inv_l = pl.reciprocal(l_sc[...], approx=True)         # (H, tq) on the EUP
        out = acc_sc[...] * inv_l[..., None]                  # (H, tq, hd) f32
        n_heads = out.shape[0]
        # One lane-dense (tq, D) store (no per-head vst.msk partial stores).
        o_ref[0] = jnp.concatenate(
            [out[h] for h in range(n_heads)], axis=-1).astype(o_ref.dtype)


def _flash_attention_call(q, k, v, *, q_tile, kv_tile, vmem_limit):
    B, H, Sa, hd = q.shape
    S = k.shape[2]
    D = H * hd
    return pl.pallas_call(
        _flash_attn_kernel,
        out_shape=jax.ShapeDtypeStruct((B, Sa, D), jnp.bfloat16),
        grid=(B, Sa // q_tile, S // kv_tile),
        in_specs=[
            pl.BlockSpec((1, H, q_tile, hd), lambda b, i, j: (b, 0, i, 0)),
            pl.BlockSpec((1, H, kv_tile, hd), lambda b, i, j: (b, 0, j, 0)),
            pl.BlockSpec((1, H, kv_tile, hd), lambda b, i, j: (b, 0, j, 0)),
        ],
        out_specs=pl.BlockSpec((1, q_tile, D), lambda b, i, j: (b, i, 0)),
        scratch_shapes=[
            pltpu.VMEM((H, q_tile), jnp.float32),     # running max (dense)
            pltpu.VMEM((H, q_tile), jnp.float32),     # running denom (dense)
            pltpu.VMEM((H, q_tile, hd), jnp.float32),  # accumulator
        ],
        compiler_params=pltpu.CompilerParams(
            dimension_semantics=("parallel", "parallel", "arbitrary"),
            vmem_limit_bytes=vmem_limit),
    )(q, k, v)


# --------------------------------------------------------------------------
# Kernel 3: out-projection + gated residual + modulated LN + GELU-tanh MLP +
# gated residual.  FF weights either fully resident (one ff step) or streamed
# over the last grid axis.
# --------------------------------------------------------------------------
def _out_proj_mlp_kernel(xa_ref, attn_ref, g_msa_ref, sh_mlp_ref, sc_mlp_ref,
                         g_mlp_ref, wout_ref, bout_ref, wff1_ref, bff1_ref,
                         wff2_ref, bff2_ref, out_ref, xa2_sc, n2_sc, ff_sc):
    c = pl.program_id(2)

    @pl.when(c == 0)
    def _():
        attn_out = jnp.dot(attn_ref[0], wout_ref[...],
                           preferred_element_type=jnp.float32) + bout_ref[...]
        xa2 = xa_ref[0] + g_msa_ref[0] * attn_out
        xa2_sc[...] = xa2
        n2 = _layernorm(xa2) * (1.0 + sc_mlp_ref[0]) + sh_mlp_ref[0]
        n2_sc[...] = n2.astype(jnp.bfloat16)
        ff_sc[...] = jnp.zeros(ff_sc.shape, ff_sc.dtype)

    # One (D, ff_tile) / (ff_tile, D) chunk of the MLP per ff grid step
    # (single step when the FF weights are fully resident).
    h1 = jnp.dot(n2_sc[...], wff1_ref[...],
                 preferred_element_type=jnp.float32) + bff1_ref[...]
    h1 = _gelu_tanh(h1)
    ff_sc[...] += jnp.dot(h1.astype(jnp.bfloat16), wff2_ref[...],
                          preferred_element_type=jnp.float32)

    @pl.when(c == pl.num_programs(2) - 1)
    def _():
        out = xa2_sc[...] + g_mlp_ref[0] * (ff_sc[...] + bff2_ref[...])
        out_ref[0] = out.astype(out_ref.dtype)


def _out_proj_mlp_call(xa, attn, g_msa, sh_mlp, sc_mlp, g_mlp,
                       wout, bout, wff1, bff1, wff2, bff2, *,
                       row_tile, ff_tile, vmem_limit):
    B, Sa, D = xa.shape
    Dff = wff1.shape[1]
    ts = row_tile
    n_ff = Dff // ff_tile
    resident = n_ff == 1

    def _ff_spec(shape, index_map):
        return (_resident_spec(shape, index_map) if resident
                else pl.BlockSpec(shape, index_map))

    return pl.pallas_call(
        _out_proj_mlp_kernel,
        out_shape=jax.ShapeDtypeStruct((B, Sa, D), jnp.float32),
        grid=(B, Sa // ts, n_ff),
        in_specs=[
            pl.BlockSpec((1, ts, D), lambda b, i, c: (b, i, 0)),       # xa (f32)
            pl.BlockSpec((1, ts, D), lambda b, i, c: (b, i, 0)),       # attn (bf16)
            pl.BlockSpec((1, 1, D), lambda b, i, c: (b, 0, 0)),        # gate_msa
            pl.BlockSpec((1, 1, D), lambda b, i, c: (b, 0, 0)),        # shift_mlp
            pl.BlockSpec((1, 1, D), lambda b, i, c: (b, 0, 0)),        # scale_mlp
            pl.BlockSpec((1, 1, D), lambda b, i, c: (b, 0, 0)),        # gate_mlp
            _resident_spec((D, D), lambda b, i, c: (0, 0)),            # wout (resident)
            _resident_spec((1, D), lambda b, i, c: (0, 0)),            # bout
            _ff_spec((D, ff_tile), lambda b, i, c: (0, c)),            # wff1
            _ff_spec((1, ff_tile), lambda b, i, c: (0, c)),            # bff1
            _ff_spec((ff_tile, D), lambda b, i, c: (c, 0)),            # wff2
            _resident_spec((1, D), lambda b, i, c: (0, 0)),            # bff2
        ],
        out_specs=pl.BlockSpec((1, ts, D), lambda b, i, c: (b, i, 0)),
        scratch_shapes=[
            pltpu.VMEM((ts, D), jnp.float32),    # xa after attention residual
            pltpu.VMEM((ts, D), jnp.bfloat16),   # modulated LN (matmul lhs)
            pltpu.VMEM((ts, D), jnp.float32),    # ff accumulator
        ],
        compiler_params=pltpu.CompilerParams(
            dimension_semantics=("parallel", "parallel", "arbitrary"),
            vmem_limit_bytes=vmem_limit),
    )(xa, attn, g_msa, sh_mlp, sc_mlp, g_mlp, wout, bout, wff1, bff1, wff2, bff2)


def _choose_mlp_tiling(Sa, D, Dff, row_tile, vmem_budget):
    ff_weight_bytes = 2 * D * Dff * 2            # wff1 + wff2, bf16
    if ff_weight_bytes <= vmem_budget // 2:
        # v5e / v6e (128 MiB VMEM) and small models: FF weights fully resident.
        return row_tile, Dff
    # v7x (64 MiB VMEM): stream the FF weights; larger row tile keeps the
    # streamed MLP above the compute ridge.
    mlp_rows = 512 if Sa % 512 == 0 else row_tile
    ff_tile = Dff
    for cand in (2048, 1024, 512, 256, 128):
        if Dff % cand == 0:
            ff_tile = cand
            break
    return mlp_rows, ff_tile


# --------------------------------------------------------------------------
# Parameter prep (one-time) and full forward
# --------------------------------------------------------------------------
def prepare_params(params, num_heads):
    """One-time prep: split projection weights into (groups, D, D), fold the
    1/sqrt(head_dim) attention scale into the q projection, and drop the
    unused b-stream q projection (only_out_a=True)."""
    D = params["wqkv_a"].shape[0]
    hd = D // num_heads
    q_scale = 1.0 / math.sqrt(hd)

    def split_w(w, n):   # (D, n*D) -> (n, D, D)
        return jnp.transpose(w.reshape(D, n, D), (1, 0, 2))

    def split_b(b, n):   # (1, n*D) -> (n, 1, D)
        return b.reshape(n, 1, D)

    wqkv_a = split_w(params["wqkv_a"], 3)
    bqkv_a = split_b(params["bqkv_a"], 3)
    wqkv_a = wqkv_a.at[0].set(
        (wqkv_a[0].astype(jnp.float32) * q_scale).astype(wqkv_a.dtype))
    bqkv_a = bqkv_a.at[0].set(bqkv_a[0] * q_scale)

    wkv_b = split_w(params["wqkv_b"], 3)[1:]     # k, v only
    bkv_b = split_b(params["bqkv_b"], 3)[1:]

    prepped = dict(params)
    prepped.update(wqkv_a=wqkv_a, bqkv_a=bqkv_a, wkv_b=wkv_b, bkv_b=bkv_b)
    return prepped


def _heads_major(x, num_heads):
    B, S, D = x.shape
    hd = D // num_heads
    return x.reshape(B, S, num_heads, hd).transpose(0, 2, 1, 3)


def joint_transformer_final_block(xa, xb, temb, params, *, num_heads,
                                  row_tile=256, kv_tile=512):
    """xa: (B, Sa, D), xb: (B, Sb, D), temb: (B, D). Returns (new_xa, xb)."""
    B, Sa, D = xa.shape
    Sb = xb.shape[1]
    if "wkv_b" not in params:
        params = prepare_params(params, num_heads)
    vmem_limit = _vmem_budget_bytes()

    # ---- adaLN modulation hoisted out of the kernels (tiny M=1 matmuls) ----
    emb = jax.nn.silu(temb.astype(jnp.float32))
    mod_a = jnp.dot(emb, params["w_mod_a"]) + params["b_mod_a"]   # (B, 6D)
    mod_b = jnp.dot(emb, params["w_mod_b"]) + params["b_mod_b"]   # (B, 2D)
    sh_msa, sc_msa, g_msa, sh_mlp, sc_mlp, g_mlp = jnp.split(
        mod_a[:, None, :], 6, axis=-1)
    sc_b, sh_b = jnp.split(mod_b[:, None, :], 2, axis=-1)

    ts_a = _tile(Sa, row_tile)
    ts_b = _tile(Sb, row_tile)

    # ---- modulated LN + projections (lane-dense (B, S, D) bf16 outputs) ----
    q_a, k_a, v_a = _ln_proj_call(xa, sc_msa, sh_msa,
                                  params["wqkv_a"], params["bqkv_a"],
                                  row_tile=ts_a, vmem_limit=vmem_limit)
    k_b, v_b = _ln_proj_call(xb, sc_b, sh_b,
                             params["wkv_b"], params["bkv_b"],
                             row_tile=ts_b, vmem_limit=vmem_limit)

    # Joint K/V + heads-major relayout done once in XLA (kernels only issue
    # lane-dense loads/stores).
    # TODO(synk): write k_b/v_b straight into joint buffers (out index_map row
    # offset + input_output_aliases) to drop the concat's extra HBM round trip.
    q = _heads_major(q_a, num_heads)
    k = _heads_major(jnp.concatenate([k_a, k_b], axis=1), num_heads)
    v = _heads_major(jnp.concatenate([v_a, v_b], axis=1), num_heads)

    # ---- flash attention over the joint sequence (outputs only a-rows) ----
    attn = _flash_attention_call(q, k, v, q_tile=ts_a,
                                 kv_tile=_tile(Sa + Sb, kv_tile),
                                 vmem_limit=vmem_limit)

    # ---- out-projection + gated residual + modulated MLP ----
    mlp_rows, ff_tile = _choose_mlp_tiling(Sa, D, params["wff1"].shape[1],
                                           ts_a, vmem_limit)
    new_xa = _out_proj_mlp_call(
        xa, attn, g_msa, sh_mlp, sc_mlp, g_mlp,
        params["wout_a"], params["bout_a"],
        params["wff1"], params["bff1"],
        params["wff2"], params["bff2"],
        row_tile=mlp_rows, ff_tile=ff_tile, vmem_limit=vmem_limit)
    return new_xa, xb


# ---------------- deterministic parameter init + pure-JAX reference ----------------
def init_params(key, dim):
    keys = jax.random.split(key, 14)
    s = 0.05
    bf16 = jnp.bfloat16

    def w(k, shape, dtype=jnp.float32):
        return (jax.random.normal(k, shape, jnp.float32) * s).astype(dtype)

    # Projection weights stored pre-transposed (in_dim, out_dim), bf16; biases
    # and the hoisted modulation weights stay f32.
    return {
        "w_mod_a": w(keys[0], (dim, 6 * dim)), "b_mod_a": w(keys[1], (1, 6 * dim)),
        "w_mod_b": w(keys[2], (dim, 2 * dim)), "b_mod_b": w(keys[3], (1, 2 * dim)),
        "wqkv_a": w(keys[4], (dim, 3 * dim), bf16), "bqkv_a": w(keys[5], (1, 3 * dim)),
        "wqkv_b": w(keys[6], (dim, 3 * dim), bf16), "bqkv_b": w(keys[7], (1, 3 * dim)),
        "wout_a": w(keys[8], (dim, dim), bf16), "bout_a": w(keys[9], (1, dim)),
        "wff1": w(keys[10], (dim, 4 * dim), bf16), "bff1": w(keys[11], (1, 4 * dim)),
        "wff2": w(keys[12], (4 * dim, dim), bf16), "bff2": w(keys[13], (1, dim)),
    }


def reference_forward(xa, xb, temb, p, num_heads):
    """Pure-JAX reference mirroring the kernel's precision policy
    (bf16 matmul operands, f32 accumulation, f32 elementwise math)."""
    f32, bf16 = jnp.float32, jnp.bfloat16
    B, Sa, D = xa.shape
    hd = D // num_heads

    emb = jax.nn.silu(temb.astype(f32))
    mod_a = jnp.dot(emb, p["w_mod_a"]) + p["b_mod_a"]
    mod_b = jnp.dot(emb, p["w_mod_b"]) + p["b_mod_b"]
    sh_msa, sc_msa, g_msa, sh_mlp, sc_mlp, g_mlp = jnp.split(
        mod_a[:, None, :], 6, axis=-1)
    sc_b, sh_b = jnp.split(mod_b[:, None, :], 2, axis=-1)

    na = _layernorm(xa) * (1 + sc_msa) + sh_msa
    nb = _layernorm(xb) * (1 + sc_b) + sh_b

    def proj(x, w, b):
        return jnp.dot(x.astype(bf16), w, preferred_element_type=f32) + b

    qkv_a = proj(na, p["wqkv_a"], p["bqkv_a"])
    qkv_b = proj(nb, p["wqkv_b"], p["bqkv_b"])

    def heads(t):  # (B, S, D) -> (B, H, S, hd)
        b_, s_, _ = t.shape
        return t.reshape(b_, s_, num_heads, hd).transpose(0, 2, 1, 3)

    scale = 1.0 / math.sqrt(hd)
    q = heads(qkv_a[..., :D] * scale).astype(bf16)
    k = heads(jnp.concatenate([qkv_a[..., D:2 * D], qkv_b[..., D:2 * D]],
                              axis=1)).astype(bf16)
    v = heads(jnp.concatenate([qkv_a[..., 2 * D:], qkv_b[..., 2 * D:]],
                              axis=1)).astype(bf16)

    s = jnp.einsum("bhqd,bhkd->bhqk", q, k, preferred_element_type=f32)
    m = jnp.max(s, axis=-1, keepdims=True)
    pexp = jnp.exp(s - m)
    l = jnp.sum(pexp, axis=-1, keepdims=True)
    pv = jnp.einsum("bhqk,bhkd->bhqd", pexp.astype(bf16), v,
                    preferred_element_type=f32)
    attn = (pv / l).transpose(0, 2, 1, 3).reshape(B, Sa, D).astype(bf16)

    attn_out = jnp.dot(attn, p["wout_a"], preferred_element_type=f32) + p["bout_a"]
    xa2 = xa + g_msa * attn_out
    n2 = _layernorm(xa2) * (1 + sc_mlp) + sh_mlp
    h1 = jnp.dot(n2.astype(bf16), p["wff1"], preferred_element_type=f32) + p["bff1"]
    h1 = _gelu_tanh(h1)
    ff = jnp.dot(h1.astype(bf16), p["wff2"], preferred_element_type=f32) + p["bff2"]
    out = xa2 + g_mlp * ff
    return out, xb


if __name__ == "__main__":
    B, Sa, Sb, D, num_heads = 2, 8, 8, 64, 2

    key = jax.random.PRNGKey(0)
    k_xa, k_xb, k_t, k_p = jax.random.split(key, 4)
    xa = jax.random.normal(k_xa, (B, Sa, D), jnp.float32)
    xb = jax.random.normal(k_xb, (B, Sb, D), jnp.float32)
    temb = jax.random.normal(k_t, (B, D), jnp.float32)
    params = init_params(k_p, D)
    kparams = prepare_params(params, num_heads)

    def run():
        return joint_transformer_final_block(xa, xb, temb, kparams,
                                              num_heads=num_heads)

    try:
        out_a, out_b = run()
    except Exception:
        # Fall back to default double-buffered weight blocks if the installed
        # Pallas version rejects pipeline_mode=Buffered(1).
        _SINGLE_BUFFER_RESIDENT[0] = False
        out_a, out_b = run()

    out_a = jax.block_until_ready(out_a)
    out_b = jax.block_until_ready(out_b)

    ref_a, ref_b = reference_forward(xa, xb, temb, params, num_heads)
    assert jnp.allclose(out_a, ref_a, rtol=1e-2, atol=1e-2), "mismatch vs reference (a)"
    assert jnp.allclose(out_b, ref_b, rtol=1e-2, atol=1e-2), "mismatch vs reference (b)"

    print("KERNEL_OK")
</pallas_src>

<mosaic_0001>
module attributes {stable_mosaic.version = 11 : i64} {
  func.func @_ln_proj_kernel(%arg0: i32, %arg1: i32, %arg2: memref<1x8x64xf32, #tpu.memory_space<vmem>>, %arg3: memref<1x1x64xf32, #tpu.memory_space<vmem>>, %arg4: memref<1x1x64xf32, #tpu.memory_space<vmem>>, %arg5: memref<3x64x64xbf16, #tpu.memory_space<vmem>>, %arg6: memref<3x1x64xf32, #tpu.memory_space<vmem>>, %arg7: memref<1x8x64xbf16, #tpu.memory_space<vmem>>, %arg8: memref<1x8x64xbf16, #tpu.memory_space<vmem>>, %arg9: memref<1x8x64xbf16, #tpu.memory_space<vmem>>) attributes {dimension_semantics = [#tpu.dimension_semantics<parallel>, #tpu.dimension_semantics<parallel>], iteration_bounds = array<i64: 2, 1>, scalar_prefetch = 0 : i64, scratch_operands = 0 : i64, tpu.core_type = #tpu.core_type<tc>, window_params = [{transform_indices = @transform_0, window_bounds = array<i64: 1, 8, 64>}, {transform_indices = @transform_1, window_bounds = array<i64: 1, 1, 64>}, {transform_indices = @transform_2, window_bounds = array<i64: 1, 1, 64>}, {pipeline_mode = #tpu.pipeline_mode<synchronous>, transform_indices = @transform_3, window_bounds = array<i64: 3, 64, 64>}, {pipeline_mode = #tpu.pipeline_mode<synchronous>, transform_indices = @transform_4, window_bounds = array<i64: 3, 1, 64>}, {transform_indices = @transform_5, window_bounds = array<i64: 1, 8, 64>}, {transform_indices = @transform_6, window_bounds = array<i64: 1, 8, 64>}, {transform_indices = @transform_7, window_bounds = array<i64: 1, 8, 64>}]} {
    %c0 = arith.constant 0 : index
    %c0_0 = arith.constant 0 : index
    %c0_1 = arith.constant 0 : index
    %0 = vector.load %arg2[%c0, %c0_0, %c0_1] : memref<1x8x64xf32, #tpu.memory_space<vmem>>, vector<1x8x64xf32>
    %1 = vector.shape_cast %0 : vector<1x8x64xf32> to vector<8x64xf32>
    %cst = arith.constant dense<0.000000e+00> : vector<8xf32>
    %2 = vector.multi_reduction <add>, %1, %cst [1] : vector<8x64xf32> to vector<8xf32>
    %3 = vector.shape_cast %2 : vector<8xf32> to vector<8x1xf32>
    %cst_2 = arith.constant 6.400000e+01 : f32
    %4 = vector.broadcast %cst_2 : f32 to vector<8x1xf32>
    %5 = arith.divf %3, %4 : vector<8x1xf32>
    %6 = vector.broadcast %5 : vector<8x1xf32> to vector<8x64xf32>
    %7 = arith.subf %1, %6 : vector<8x64xf32>
    %8 = arith.mulf %7, %7 : vector<8x64xf32>
    %cst_3 = arith.constant dense<0.000000e+00> : vector<8xf32>
    %9 = vector.multi_reduction <add>, %8, %cst_3 [1] : vector<8x64xf32> to vector<8xf32>
    %10 = vector.shape_cast %9 : vector<8xf32> to vector<8x1xf32>
    %cst_4 = arith.constant 6.400000e+01 : f32
    %11 = vector.broadcast %cst_4 : f32 to vector<8x1xf32>
    %12 = arith.divf %10, %11 : vector<8x1xf32>
    %13 = vector.broadcast %5 : vector<8x1xf32> to vector<8x64xf32>
    %14 = arith.subf %1, %13 : vector<8x64xf32>
    %cst_5 = arith.constant 9.99999997E-7 : f32
    %15 = vector.broadcast %cst_5 : f32 to vector<8x1xf32>
    %16 = arith.addf %12, %15 : vector<8x1xf32>
    %17 = math.rsqrt %16 : vector<8x1xf32>
    %18 = vector.broadcast %17 : vector<8x1xf32> to vector<8x64xf32>
    %19 = arith.mulf %14, %18 : vector<8x64xf32>
    %c0_6 = arith.constant 0 : index
    %c0_7 = arith.constant 0 : index
    %c0_8 = arith.constant 0 : index
    %20 = vector.load %arg3[%c0_6, %c0_7, %c0_8] : memref<1x1x64xf32, #tpu.memory_space<vmem>>, vector<1x1x64xf32>
    %21 = vector.shape_cast %20 : vector<1x1x64xf32> to vector<1x64xf32>
    %cst_9 = arith.constant 1.000000e+00 : f32
    %22 = vector.broadcast %cst_9 : f32 to vector<1x64xf32>
    %23 = arith.addf %22, %21 : vector<1x64xf32>
    %24 = vector.broadcast %23 : vector<1x64xf32> to vector<8x64xf32>
    %25 = arith.mulf %19, %24 : vector<8x64xf32>
    %c0_10 = arith.constant 0 : index
    %c0_11 = arith.constant 0 : index
    %c0_12 = arith.constant 0 : index
    %26 = vector.load %arg4[%c0_10, %c0_11, %c0_12] : memref<1x1x64xf32, #tpu.memory_space<vmem>>, vector<1x1x64xf32>
    %27 = vector.shape_cast %26 : vector<1x1x64xf32> to vector<1x64xf32>
    %28 = vector.broadcast %27 : vector<1x64xf32> to vector<8x64xf32>
    %29 = arith.addf %25, %28 : vector<8x64xf32>
    %30 = arith.truncf %29 : vector<8x64xf32> to vector<8x64xbf16>
    %c0_13 = arith.constant 0 : index
    %c0_14 = arith.constant 0 : index
    %c0_15 = arith.constant 0 : index
    %31 = vector.load %arg5[%c0_13, %c0_14, %c0_15] : memref<3x64x64xbf16, #tpu.memory_space<vmem>>, vector<1x64x64xbf16>
    %32 = vector.shape_cast %31 : vector<1x64x64xbf16> to vector<64x64xbf16>
    %cst_16 = arith.constant dense<0.000000e+00> : vector<8x64xf32>
    %33 = tpu.matmul %30, %32, %cst_16 {dimension_numbers = #tpu.dot_dimension_numbers<[1], [0], [0], [1], [0, 0, 1, 1], [], []>} : vector<8x64xbf16>, vector<64x64xbf16>, vector<8x64xf32> -> vector<8x64xf32>
    %c0_17 = arith.constant 0 : index
    %c0_18 = arith.constant 0 : index
    %c0_19 = arith.constant 0 : index
    %34 = vector.load %arg6[%c0_17, %c0_18, %c0_19] : memref<3x1x64xf32, #tpu.memory_space<vmem>>, vector<1x1x64xf32>
    %35 = vector.shape_cast %34 : vector<1x1x64xf32> to vector<1x64xf32>
    %36 = vector.broadcast %35 : vector<1x64xf32> to vector<8x64xf32>
    %37 = arith.addf %33, %36 : vector<8x64xf32>
    %38 = arith.truncf %37 : vector<8x64xf32> to vector<8x64xbf16>
    %c0_20 = arith.constant 0 : index
    %c0_21 = arith.constant 0 : index
    %c0_22 = arith.constant 0 : index
    %39 = vector.load %arg7[%c0_20, %c0_21, %c0_22] : memref<1x8x64xbf16, #tpu.memory_space<vmem>>, vector<1x8x64xbf16>
    %40 = vector.shape_cast %39 : vector<1x8x64xbf16> to vector<8x64xbf16>
    %41 = vector.shape_cast %38 : vector<8x64xbf16> to vector<1x8x64xbf16>
    tpu.vector_store %arg7[%c0_20, %c0_21, %c0_22], %41 {strides = array<i32>} : memref<1x8x64xbf16, #tpu.memory_space<vmem>>, vector<1x8x64xbf16>,
    %c1 = arith.constant 1 : index
    %c0_23 = arith.constant 0 : index
    %c0_24 = arith.constant 0 : index
    %42 = vector.load %arg5[%c1, %c0_23, %c0_24] : memref<3x64x64xbf16, #tpu.memory_space<vmem>>, vector<1x64x64xbf16>
    %43 = vector.shape_cast %42 : vector<1x64x64xbf16> to vector<64x64xbf16>
    %cst_25 = arith.constant dense<0.000000e+00> : vector<8x64xf32>
    %44 = tpu.matmul %30, %43, %cst_25 {dimension_numbers = #tpu.dot_dimension_numbers<[1], [0], [0], [1], [0, 0, 1, 1], [], []>} : vector<8x64xbf16>, vector<64x64xbf16>, vector<8x64xf32> -> vector<8x64xf32>
    %c1_26 = arith.constant 1 : index
    %c0_27 = arith.constant 0 : index
    %c0_28 = arith.constant 0 : index
    %45 = vector.load %arg6[%c1_26, %c0_27, %c0_28] : memref<3x1x64xf32, #tpu.memory_space<vmem>>, vector<1x1x64xf32>
    %46 = vector.shape_cast %45 : vector<1x1x64xf32> to vector<1x64xf32>
    %47 = vector.broadcast %46 : vector<1x64xf32> to vector<8x64xf32>
    %48 = arith.addf %44, %47 : vector<8x64xf32>
    %49 = arith.truncf %48 : vector<8x64xf32> to vector<8x64xbf16>
    %c0_29 = arith.constant 0 : index
    %c0_30 = arith.constant 0 : index
    %c0_31 = arith.constant 0 : index
    %50 = vector.load %arg8[%c0_29, %c0_30, %c0_31] : memref<1x8x64xbf16, #tpu.memory_space<vmem>>, vector<1x8x64xbf16>
    %51 = vector.shape_cast %50 : vector<1x8x64xbf16> to vector<8x64xbf16>
    %52 = vector.shape_cast %49 : vector<8x64xbf16> to vector<1x8x64xbf16>
    tpu.vector_store %arg8[%c0_29, %c0_30, %c0_31], %52 {strides = array<i32>} : memref<1x8x64xbf16, #tpu.memory_space<vmem>>, vector<1x8x64xbf16>,
    %c2 = arith.constant 2 : index
    %c0_32 = arith.constant 0 : index
    %c0_33 = arith.constant 0 : index
    %53 = vector.load %arg5[%c2, %c0_32, %c0_33] : memref<3x64x64xbf16, #tpu.memory_space<vmem>>, vector<1x64x64xbf16>
    %54 = vector.shape_cast %53 : vector<1x64x64xbf16> to vector<64x64xbf16>
    %cst_34 = arith.constant dense<0.000000e+00> : vector<8x64xf32>
    %55 = tpu.matmul %30, %54, %cst_34 {dimension_numbers = #tpu.dot_dimension_numbers<[1], [0], [0], [1], [0, 0, 1, 1], [], []>} : vector<8x64xbf16>, vector<64x64xbf16>, vector<8x64xf32> -> vector<8x64xf32>
    %c2_35 = arith.constant 2 : index
    %c0_36 = arith.constant 0 : index
    %c0_37 = arith.constant 0 : index
    %56 = vector.load %arg6[%c2_35, %c0_36, %c0_37] : memref<3x1x64xf32, #tpu.memory_space<vmem>>, vector<1x1x64xf32>
    %57 = vector.shape_cast %56 : vector<1x1x64xf32> to vector<1x64xf32>
    %58 = vector.broadcast %57 : vector<1x64xf32> to vector<8x64xf32>
    %59 = arith.addf %55, %58 : vector<8x64xf32>
    %60 = arith.truncf %59 : vector<8x64xf32> to vector<8x64xbf16>
    %c0_38 = arith.constant 0 : index
    %c0_39 = arith.constant 0 : index
    %c0_40 = arith.constant 0 : index
    %61 = vector.load %arg9[%c0_38, %c0_39, %c0_40] : memref<1x8x64xbf16, #tpu.memory_space<vmem>>, vector<1x8x64xbf16>
    %62 = vector.shape_cast %61 : vector<1x8x64xbf16> to vector<8x64xbf16>
    %63 = vector.shape_cast %60 : vector<8x64xbf16> to vector<1x8x64xbf16>
    tpu.vector_store %arg9[%c0_38, %c0_39, %c0_40], %63 {strides = array<i32>} : memref<1x8x64xbf16, #tpu.memory_space<vmem>>, vector<1x8x64xbf16>,
    return
  }
  func.func @transform_0(%arg0: i32, %arg1: i32) -> (i32, i32, i32) {
    %c0_i32 = arith.constant 0 : i32
    %c0_i32_0 = arith.constant 0 : i32
    return %arg0, %arg1, %c0_i32 : i32, i32, i32
  }
  func.func @transform_1(%arg0: i32, %arg1: i32) -> (i32, i32, i32) {
    %c0_i32 = arith.constant 0 : i32
    %c0_i32_0 = arith.constant 0 : i32
    %c0_i32_1 = arith.constant 0 : i32
    return %arg0, %c0_i32, %c0_i32_0 : i32, i32, i32
  }
  func.func @transform_2(%arg0: i32, %arg1: i32) -> (i32, i32, i32) {
    %c0_i32 = arith.constant 0 : i32
    %c0_i32_0 = arith.constant 0 : i32
    %c0_i32_1 = arith.constant 0 : i32
    return %arg0, %c0_i32, %c0_i32_0 : i32, i32, i32
  }
  func.func @transform_3(%arg0: i32, %arg1: i32) -> (i32, i32, i32) {
    %c0_i32 = arith.constant 0 : i32
    %c0_i32_0 = arith.constant 0 : i32
    %c0_i32_1 = arith.constant 0 : i32
    %c0_i32_2 = arith.constant 0 : i32
    return %c0_i32, %c0_i32_0, %c0_i32_1 : i32, i32, i32
  }
  func.func @transform_4(%arg0: i32, %arg1: i32) -> (i32, i32, i32) {
    %c0_i32 = arith.constant 0 : i32
    %c0_i32_0 = arith.constant 0 : i32
    %c0_i32_1 = arith.constant 0 : i32
    %c0_i32_2 = arith.constant 0 : i32
    return %c0_i32, %c0_i32_0, %c0_i32_1 : i32, i32, i32
  }
  func.func @transform_5(%arg0: i32, %arg1: i32) -> (i32, i32, i32) {
    %c0_i32 = arith.constant 0 : i32
    %c0_i32_0 = arith.constant 0 : i32
    return %arg0, %arg1, %c0_i32 : i32, i32, i32
  }
  func.func @transform_6(%arg0: i32, %arg1: i32) -> (i32, i32, i32) {
    %c0_i32 = arith.constant 0 : i32
    %c0_i32_0 = arith.constant 0 : i32
    return %arg0, %arg1, %c0_i32 : i32, i32, i32
  }
  func.func @transform_7(%arg0: i32, %arg1: i32) -> (i32, i32, i32) {
    %c0_i32 = arith.constant 0 : i32
    %c0_i32_0 = arith.constant 0 : i32
    return %arg0, %arg1, %c0_i32 : i32, i32, i32
  }
}

module attributes {stable_mosaic.version = 11 : i64} {
  func.func @_ln_proj_kernel(%arg0: i32, %arg1: i32, %arg2: memref<1x8x64xf32, #tpu.memory_space<vmem>>, %arg3: memref<1x1x64xf32, #tpu.memory_space<vmem>>, %arg4: memref<1x1x64xf32, #tpu.memory_space<vmem>>, %arg5: memref<3x64x64xbf16, #tpu.memory_space<vmem>>, %arg6: memref<3x1x64xf32, #tpu.memory_space<vmem>>, %arg7: memref<1x8x64xbf16, #tpu.memory_space<vmem>>, %arg8: memref<1x8x64xbf16, #tpu.memory_space<vmem>>, %arg9: memref<1x8x64xbf16, #tpu.memory_space<vmem>>) attributes {dimension_semantics = [#tpu.dimension_semantics<parallel>, #tpu.dimension_semantics<parallel>], iteration_bounds = array<i64: 2, 1>, scalar_prefetch = 0 : i64, scratch_operands = 0 : i64, tpu.core_type = #tpu.core_type<tc>, window_params = [{transform_indices = @transform_0, window_bounds = array<i64: 1, 8, 64>}, {transform_indices = @transform_1, window_bounds = array<i64: 1, 1, 64>}, {transform_indices = @transform_2, window_bounds = array<i64: 1, 1, 64>}, {pipeline_mode = #tpu.pipeline_mode<synchronous>, transform_indices = @transform_3, window_bounds = array<i64: 3, 64, 64>}, {pipeline_mode = #tpu.pipeline_mode<synchronous>, transform_indices = @transform_4, window_bounds = array<i64: 3, 1, 64>}, {transform_indices = @transform_5, window_bounds = array<i64: 1, 8, 64>}, {transform_indices = @transform_6, window_bounds = array<i64: 1, 8, 64>}, {transform_indices = @transform_7, window_bounds = array<i64: 1, 8, 64>}]} {
    %c0 = arith.constant 0 : index
    %c0_0 = arith.constant 0 : index
    %c0_1 = arith.constant 0 : index
    %0 = vector.load %arg2[%c0, %c0_0, %c0_1] : memref<1x8x64xf32, #tpu.memory_space<vmem>>, vector<1x8x64xf32>
    %1 = vector.shape_cast %0 : vector<1x8x64xf32> to vector<8x64xf32>
    %cst = arith.constant dense<0.000000e+00> : vector<8xf32>
    %2 = vector.multi_reduction <add>, %1, %cst [1] : vector<8x64xf32> to vector<8xf32>
    %3 = vector.shape_cast %2 : vector<8xf32> to vector<8x1xf32>
    %cst_2 = arith.constant 6.400000e+01 : f32
    %4 = vector.broadcast %cst_2 : f32 to vector<8x1xf32>
    %5 = arith.divf %3, %4 : vector<8x1xf32>
    %6 = vector.broadcast %5 : vector<8x1xf32> to vector<8x64xf32>
    %7 = arith.subf %1, %6 : vector<8x64xf32>
    %8 = arith.mulf %7, %7 : vector<8x64xf32>
    %cst_3 = arith.constant dense<0.000000e+00> : vector<8xf32>
    %9 = vector.multi_reduction <add>, %8, %cst_3 [1] : vector<8x64xf32> to vector<8xf32>
    %10 = vector.shape_cast %9 : vector<8xf32> to vector<8x1xf32>
    %cst_4 = arith.constant 6.400000e+01 : f32
    %11 = vector.broadcast %cst_4 : f32 to vector<8x1xf32>
    %12 = arith.divf %10, %11 : vector<8x1xf32>
    %13 = vector.broadcast %5 : vector<8x1xf32> to vector<8x64xf32>
    %14 = arith.subf %1, %13 : vector<8x64xf32>
    %cst_5 = arith.constant 9.99999997E-7 : f32
    %15 = vector.broadcast %cst_5 : f32 to vector<8x1xf32>
    %16 = arith.addf %12, %15 : vector<8x1xf32>
    %17 = math.rsqrt %16 : vector<8x1xf32>
    %18 = vector.broadcast %17 : vector<8x1xf32> to vector<8x64xf32>
    %19 = arith.mulf %14, %18 : vector<8x64xf32>
    %c0_6 = arith.constant 0 : index
    %c0_7 = arith.constant 0 : index
    %c0_8 = arith.constant 0 : index
    %20 = vector.load %arg3[%c0_6, %c0_7, %c0_8] : memref<1x1x64xf32, #tpu.memory_space<vmem>>, vector<1x1x64xf32>
    %21 = vector.shape_cast %20 : vector<1x1x64xf32> to vector<1x64xf32>
    %cst_9 = arith.constant 1.000000e+00 : f32
    %22 = vector.broadcast %cst_9 : f32 to vector<1x64xf32>
    %23 = arith.addf %22, %21 : vector<1x64xf32>
    %24 = vector.broadcast %23 : vector<1x64xf32> to vector<8x64xf32>
    %25 = arith.mulf %19, %24 : vector<8x64xf32>
    %c0_10 = arith.constant 0 : index
    %c0_11 = arith.constant 0 : index
    %c0_12 = arith.constant 0 : index
    %26 = vector.load %arg4[%c0_10, %c0_11, %c0_12] : memref<1x1x64xf32, #tpu.memory_space<vmem>>, vector<1x1x64xf32>
    %27 = vector.shape_cast %26 : vector<1x1x64xf32> to vector<1x64xf32>
    %28 = vector.broadcast %27 : vector<1x64xf32> to vector<8x64xf32>
    %29 = arith.addf %25, %28 : vector<8x64xf32>
    %30 = arith.truncf %29 : vector<8x64xf32> to vector<8x64xbf16>
    %c0_13 = arith.constant 0 : index
    %c0_14 = arith.constant 0 : index
    %c0_15 = arith.constant 0 : index
    %31 = vector.load %arg5[%c0_13, %c0_14, %c0_15] : memref<3x64x64xbf16, #tpu.memory_space<vmem>>, vector<1x64x64xbf16>
    %32 = vector.shape_cast %31 : vector<1x64x64xbf16> to vector<64x64xbf16>
    %cst_16 = arith.constant dense<0.000000e+00> : vector<8x64xf32>
    %33 = tpu.matmul %30, %32, %cst_16 {dimension_numbers = #tpu.dot_dimension_numbers<[1], [0], [0], [1], [0, 0, 1, 1], [], []>} : vector<8x64xbf16>, vector<64x64xbf16>, vector<8x64xf32> -> vector<8x64xf32>
    %c0_17 = arith.constant 0 : index
    %c0_18 = arith.constant 0 : index
    %c0_19 = arith.constant 0 : index
    %34 = vector.load %arg6[%c0_17, %c0_18, %c0_19] : memref<3x1x64xf32, #tpu.memory_space<vmem>>, vector<1x1x64xf32>
    %35 = vector.shape_cast %34 : vector<1x1x64xf32> to vector<1x64xf32>
    %36 = vector.broadcast %35 : vector<1x64xf32> to vector<8x64xf32>
    %37 = arith.addf %33, %36 : vector<8x64xf32>
    %38 = arith.truncf %37 : vector<8x64xf32> to vector<8x64xbf16>
    %c0_20 = arith.constant 0 : index
    %c0_21 = arith.constant 0 : index
    %c0_22 = arith.constant 0 : index
    %39 = vector.load %arg7[%c0_20, %c0_21, %c0_22] : memref<1x8x64xbf16, #tpu.memory_space<vmem>>, vector<1x8x64xbf16>
    %40 = vector.shape_cast %39 : vector<1x8x64xbf16> to vector<8x64xbf16>
    %41 = vector.shape_cast %38 : vector<8x64xbf16> to vector<1x8x64xbf16>
    tpu.vector_store %arg7[%c0_20, %c0_21, %c0_22], %41 {strides = array<i32>} : memref<1x8x64xbf16, #tpu.memory_space<vmem>>, vector<1x8x64xbf16>,
    %c1 = arith.constant 1 : index
    %c0_23 = arith.constant 0 : index
    %c0_24 = arith.constant 0 : index
    %42 = vector.load %arg5[%c1, %c0_23, %c0_24] : memref<3x64x64xbf16, #tpu.memory_space<vmem>>, vector<1x64x64xbf16>
    %43 = vector.shape_cast %42 : vector<1x64x64xbf16> to vector<64x64xbf16>
    %cst_25 = arith.constant dense<0.000000e+00> : vector<8x64xf32>
    %44 = tpu.matmul %30, %43, %cst_25 {dimension_numbers = #tpu.dot_dimension_numbers<[1], [0], [0], [1], [0, 0, 1, 1], [], []>} : vector<8x64xbf16>, vector<64x64xbf16>, vector<8x64xf32> -> vector<8x64xf32>
    %c1_26 = arith.constant 1 : index
    %c0_27 = arith.constant 0 : index
    %c0_28 = arith.constant 0 : index
    %45 = vector.load %arg6[%c1_26, %c0_27, %c0_28] : memref<3x1x64xf32, #tpu.memory_space<vmem>>, vector<1x1x64xf32>
    %46 = vector.shape_cast %45 : vector<1x1x64xf32> to vector<1x64xf32>
    %47 = vector.broadcast %46 : vector<1x64xf32> to vector<8x64xf32>
    %48 = arith.addf %44, %47 : vector<8x64xf32>
    %49 = arith.truncf %48 : vector<8x64xf32> to vector<8x64xbf16>
    %c0_29 = arith.constant 0 : index
    %c0_30 = arith.constant 0 : index
    %c0_31 = arith.constant 0 : index
    %50 = vector.load %arg8[%c0_29, %c0_30, %c0_31] : memref<1x8x64xbf16, #tpu.memory_space<vmem>>, vector<1x8x64xbf16>
    %51 = vector.shape_cast %50 : vector<1x8x64xbf16> to vector<8x64xbf16>
    %52 = vector.shape_cast %49 : vector<8x64xbf16> to vector<1x8x64xbf16>
    tpu.vector_store %arg8[%c0_29, %c0_30, %c0_31], %52 {strides = array<i32>} : memref<1x8x64xbf16, #tpu.memory_space<vmem>>, vector<1x8x64xbf16>,
    %c2 = arith.constant 2 : index
    %c0_32 = arith.constant 0 : index
    %c0_33 = arith.constant 0 : index
    %53 = vector.load %arg5[%c2, %c0_32, %c0_33] : memref<3x64x64xbf16, #tpu.memory_space<vmem>>, vector<1x64x64xbf16>
    %54 = vector.shape_cast %53 : vector<1x64x64xbf16> to vector<64x64xbf16>
    %cst_34 = arith.constant dense<0.000000e+00> : vector<8x64xf32>
    %55 = tpu.matmul %30, %54, %cst_34 {dimension_numbers = #tpu.dot_dimension_numbers<[1], [0], [0], [1], [0, 0, 1, 1], [], []>} : vector<8x64xbf16>, vector<64x64xbf16>, vector<8x64xf32> -> vector<8x64xf32>
    %c2_35 = arith.constant 2 : index
    %c0_36 = arith.constant 0 : index
    %c0_37 = arith.constant 0 : index
    %56 = vector.load %arg6[%c2_35, %c0_36, %c0_37] : memref<3x1x64xf32, #tpu.memory_space<vmem>>, vector<1x1x64xf32>
    %57 = vector.shape_cast %56 : vector<1x1x64xf32> to vector<1x64xf32>
    %58 = vector.broadcast %57 : vector<1x64xf32> to vector<8x64xf32>
    %59 = arith.addf %55, %58 : vector<8x64xf32>
    %60 = arith.truncf %59 : vector<8x64xf32> to vector<8x64xbf16>
    %c0_38 = arith.constant 0 : index
    %c0_39 = arith.constant 0 : index
    %c0_40 = arith.constant 0 : index
    %61 = vector.load %arg9[%c0_38, %c0_39, %c0_40] : memref<1x8x64xbf16, #tpu.memory_space<vmem>>, vector<1x8x64xbf16>
    %62 = vector.shape_cast %61 : vector<1x8x64xbf16> to vector<8x64xbf16>
    %63 = vector.shape_cast %60 : vector<8x64xbf16> to vector<1x8x64xbf16>
    tpu.vector_store %arg9[%c0_38, %c0_39, %c0_40], %63 {strides = array<i32>} : memref<1x8x64xbf16, #tpu.memory_space<vmem>>, vector<1x8x64xbf16>,
    return
  }
  func.func @transform_0(%arg0: i32, %arg1: i32) -> (i32, i32, i32) {
    %c0_i32 = arith.constant 0 : i32
    %c0_i32_0 = arith.constant 0 : i32
    return %arg0, %arg1, %c0_i32 : i32, i32, i32
  }
  func.func @transform_1(%arg0: i32, %arg1: i32) -> (i32, i32, i32) {
    %c0_i32 = arith.constant 0 : i32
    %c0_i32_0 = arith.constant 0 : i32
    %c0_i32_1 = arith.constant 0 : i32
    return %arg0, %c0_i32, %c0_i32_0 : i32, i32, i32
  }
  func.func @transform_2(%arg0: i32, %arg1: i32) -> (i32, i32, i32) {
    %c0_i32 = arith.constant 0 : i32
    %c0_i32_0 = arith.constant 0 : i32
    %c0_i32_1 = arith.constant 0 : i32
    return %arg0, %c0_i32, %c0_i32_0 : i32, i32, i32
  }
  func.func @transform_3(%arg0: i32, %arg1: i32) -> (i32, i32, i32) {
    %c0_i32 = arith.constant 0 : i32
    %c0_i32_0 = arith.constant 0 : i32
    %c0_i32_1 = arith.constant 0 : i32
    %c0_i32_2 = arith.constant 0 : i32
    return %c0_i32, %c0_i32_0, %c0_i32_1 : i32, i32, i32
  }
  func.func @transform_4(%arg0: i32, %arg1: i32) -> (i32, i32, i32) {
    %c0_i32 = arith.constant 0 : i32
    %c0_i32_0 = arith.constant 0 : i32
    %c0_i32_1 = arith.constant 0 : i32
    %c0_i32_2 = arith.constant 0 : i32
    return %c0_i32, %c0_i32_0, %c0_i32_1 : i32, i32, i32
  }
  func.func @transform_5(%arg0: i32, %arg1: i32) -> (i32, i32, i32) {
    %c0_i32 = arith.constant 0 : i32
    %c0_i32_0 = arith.constant 0 : i32
    return %arg0, %arg1, %c0_i32 : i32, i32, i32
  }
  func.func @transform_6(%arg0: i32, %arg1: i32) -> (i32, i32, i32) {
    %c0_i32 = arith.constant 0 : i32
    %c0_i32_0 = arith.constant 0 : i32
    return %arg0, %arg1, %c0_i32 : i32, i32, i32
  }
  func.func @transform_7(%arg0: i32, %arg1: i32) -> (i32, i32, i32) {
    %c0_i32 = arith.constant 0 : i32
    %c0_i32_0 = arith.constant 0 : i32
    return %arg0, %arg1, %c0_i32 : i32, i32, i32
  }
}

</mosaic_0001>

<bundles_post_ra>
// kernel: tpu_custom_call.1
= control target key start
LH: loop header
LB: loop body
LE: loop exit
PB: predicated region body
PF: predicated region fallthrough
CT: control target
= control target key end

     0   :  { %s1643_s0 = inlined_call_operand.hbm [shape: f32[2,8,64], index: 0, kind: input, shape index: {}]   ;;  %s1644_s1 = inlined_call_operand.vmem [shape: f32[2,1,64], index: 1, kind: input, shape index: {}]   ;;  %s1645_s2 = inlined_call_operand.vmem [shape: f32[2,1,64], index: 2, kind: input, shape index: {}]   ;;  %s1646_s3 = inlined_call_operand.hbm [shape: bf16[3,64,64], index: 3, kind: input, shape index: {}]   ;;  %s1647_s4 = inlined_call_operand.vmem [shape: f32[3,1,64], index: 4, kind: input, shape index: {}]   ;;  %s1648_s5 = inlined_call_operand.hbm [shape: bf16[2,8,64], index: 5, kind: output, shape index: {0}]   ;;  %s1649_s6 = inlined_call_operand.hbm [shape: bf16[2,8,64], index: 6, kind: output, shape index: {1}]   ;;  %s1650_s7 = inlined_call_operand.hbm [shape: bf16[2,8,64], index: 7, kind: output, shape index: {2}]  }
   0x1   :  { %1656 = sst [smem:[#allocation16_spill]] %s1646_s3 }
   0x2   :  { %13 = vsyncpa [#allocation3], 0 }
   0x3   :  { %15 = vsyncpa [#allocation3 + $0x1], 0 }
   0x4   :  { %16 = vsyncpa [#allocation6], 0 }
   0x5   :  { %17 = vsyncpa [#allocation4], 0 }
   0x6   :  { %19 = vsyncpa [#allocation4 + $0x1], 0 }
   0x7   :  { %20 = vsyncpa [#allocation9], 0 }
   0x8   :  { %22 = vsyncpa [#allocation9 + $0x1], 0  ;;  %s1335_s24 = smov 0   ;;  %s1337_s25 = smov 0  }
   0x9   :  { %s1339_s26 = smov 0   ;;  %s1341_s27 = smov 0  }
   0xa   :  { %s1343_s28 = smov 0   ;;  %s1345_s29 = smov 0  }
   0xb LB: > { %s1366_s30 = sadd.s32 4294967295, %s1284_s29   ;;  %s1654_s8 = sadd.s32 4294967294, %s1284_s29   ;;  %s1284_s29 = sphi %s1345_s29, %s28_s29   ;;  %s1280_s28 = sphi %s1343_s28, %s1679_s28   ;;  %s1276_s27 = sphi %s1341_s27, %s1678_s27   ;;  %s1272_s26 = sphi %s1339_s26, %s1677_s26   ;;  %s1268_s25 = sphi %s1337_s25, %s1676_s25   ;;  %s1264_s24 = sphi %s1335_s24, %s1675_s24  }
   0xc   : > { %p62_p0 = scmp.ne.s32.totalorder %s1268_s25, %s1264_s24  ;;  %p1651_p1 = scmp.eq.s32.totalorder %s1366_s30, 0 }
   0xd   : > { %p188_p3 = scmp.eq.s32.totalorder %s1654_s8, 1  ;;  %p888_p5 = scmp.ge.s32.totalorder %s1284_s29, 1 }
   0xe   : > { %p1377_p4 = por %p1651_p1, %p62_p0  ;;  %p251_p7 = scmp.lt.s32.totalorder %s1284_s29, 3 }
   0xf   : > { %p1382_p6 = por %p188_p3, %p62_p0  ;;  %s1286_s12 = smov [#allocation5]  }
  0x10   : > { %s1657_s9 = scalar_select %p1377_p4, 1, 0 }
  0x11   : > { %s1658_s10 = scalar_select %p1382_p6, 1, 0 }
  0x12   : > { %p1387_p8 = pnand %p888_p5, %p251_p7  ;;  %s263_s13 = sshll.u32 %s1286_s12, 4  ;;  %s264_s13 = int_to_ptr.vmem [resolvable:$true] %s263_s13 }
  0x13   : > { %s40_s15 = sadd.s32 1, %s1280_s28  ;;  %s1661_s3 = sld [smem:[#allocation16_spill]] }
  0x14   : > { %s1659_s11 = scalar_select %p1387_p8, 1, 0 }
  0x15   : > { %p991_p9 = pneg %p1387_p8 }
  0x17   : > { %p1396_p11 = pnand %p991_p9, %p1651_p1 }
  0x19   : > { %s1080_s18 = scalar_lea.hbm %s1661_s3, 1536  ;;  %p1082_p13 = pneg %p1396_p11 }
  0x1a   : > { %p1081_p12 = scmp.ne.s32.totalorder %s1661_s3, %s1080_s18  ;;  %p1087_p5 = scmp.lt.u32.totalorder %s1080_s18, %s1661_s3 }
  0x1c   : > { %p1083_p0 = pnand %p1082_p13, %p1081_p12 }
  0x1e   : > { %p1084_p3 = pneg %p1083_p0 }
  0x20   : > { %p1089_p7 = pnand %p1087_p5, %p1084_p3 }
  0x22   : > { %1092 = shalt.err (!%p1089_p7)
}
  0x23   : > { %s1093_s23 = scalar_lea.vmem %s264_s13, 1536  ;;  %p1101_p2 = scmp.lt.s32.totalorder %s264_s13, %s264_s13 }
  0x24   : > { %p1094_p9 = scmp.ne.s32.totalorder %s264_s13, %s1093_s23  ;;  %p1102_p6 = scmp.lt.s32.totalorder %s1093_s23, %s1093_s23 }
  0x26   : > { %p1096_p10 = pnand %p1094_p9, %p1082_p13  ;;  %p1103_p4 = por %p1102_p6, %p1101_p2 }
  0x28   : > { %p1097_p1 = pneg %p1096_p10 }
  0x2a   : > { %p1104_p8 = pnand %p1103_p4, %p1097_p1 }
  0x2c   : > { %1107 = shalt.err (!%p1104_p8)
}
  0x2d   : > { %s1287_s12 = smov 64   ;;  %s1288_s16 = smov 4  }
  0x2e   : > { %994 = dma.hbm_to_vmem [thread:$0]  (!%p1396_p11), %s1661_s3, 1536, %s264_s13, [#allocation6], %s1287_s12, %s1287_s12, %s1288_s16  }
  0x2f   : > { %p42_p1 = scmp.ge.s32.totalorder %s40_s15, 2  ;;  %s49_s19 = sadd.s32 1, %s1272_s26 }
  0x30   : > { %p56_p2 = scmp.ne.s32.totalorder %s1272_s26, %s1268_s25  ;;  %p57_p4 = scmp.eq.s32.totalorder %s1284_s29, 0 }
  0x31   : > { %s1681_s15 = smov (%p42_p1, %s40_s15), 0  ;;  %p1664_p8 = scmp.eq.s32.totalorder %s1366_s30, 1 }
  0x32   : > { %1662 = sst [smem:[#allocation15_spill]] %s1681_s15  ;;  %p1423_p6 = por %p57_p4, %p56_p2 }
  0x33   : > { %p1429_p10 = por %p1664_p8, %p56_p2  ;;  %s44_s14 = ssub.s32 %s1280_s28, %s1681_s15 }
  0x34   : > { %p1010_p12 = scmp.lt.s32.totalorder %s1284_s29, 2  ;;  %p47_p11 = scmp.eq.s32.totalorder %s44_s14, 0 }
  0x35   : > { %s280_s13 = sand.u32 1, %s1272_s26   ;;  %s892_s12 = sshll.u32 %s1280_s28, 7 }
  0x36   : > { %s891_s22 = sshll.u32 %s280_s13, 3  ;;  %s1444_s18 = scalar_lea.hbm %s1643_s0, %s892_s12 }
  0x37   : > { %s1438_s23 = scalar_select %p47_p11, %s1272_s26, %s49_s19  }
  0x38   : > { %s284_s8 = scalar_lea.vmem [#allocation2], %s891_s22  ;;  %p1450_p13 = pnand %p1010_p12, %p1423_p6 }
  0x39   : > { %s292_s3 = sshll.u32 %s284_s8, 4  ;;  %s281_s19 = scalar_lea.sflag [#allocation3], %s280_s13  ;;  %s1446_s3 = int_to_ptr.vmem [resolvable:$true] %s292_s3 }
  0x3a   : > { %s1108_s15 = scalar_lea.hbm %s1444_s18, 128  ;;  %p1110_p3 = pneg %p1450_p13 }
  0x3b   : > { %p1109_p0 = scmp.ne.s32.totalorder %s1444_s18, %s1108_s15  ;;  %s1113_s12 = scalar_lea.hbm %s1643_s0, 256 }
  0x3c   : > { %p1114_p9 = scmp.lt.u32.totalorder %s1444_s18, %s1643_s0  ;;  %p1115_p1 = scmp.lt.u32.totalorder %s1113_s12, %s1108_s15 }
  0x3d   : > { %p1111_p5 = pnand %p1110_p3, %p1109_p0  ;;  %p1117_p4 = scmp.lt.u32.totalorder %s1108_s15, %s1444_s18 }
  0x3e   : > { %p1116_p2 = por %p1115_p1, %p1114_p9 }
  0x3f   : > { %p1112_p7 = pneg %p1111_p5 }
  0x40   : > { %p1118_p6 = por %p1117_p4, %p1116_p2 }
  0x42   : > { %p1119_p8 = pnand %p1118_p6, %p1112_p7 }
  0x44   : > { %1122 = shalt.err (!%p1119_p8)
}
  0x45   : > { %s1123_s13 = scalar_lea.vmem %s1446_s3, 128  ;;  %s1289_s17 = smov [#allocation2]  }
  0x46   : > { %p1124_p12 = scmp.ne.s32.totalorder %s1446_s3, %s1123_s13  ;;  %s1128_s22 = sshll.u32 %s1289_s17, 4  ;;  %s1129_s22 = int_to_ptr.vmem [resolvable:$false] %s1128_s22 }
  0x47   : > { %s1130_s8 = scalar_lea.vmem %s1129_s22, 256  ;;  %p1131_p5 = scmp.lt.s32.totalorder %s1446_s3, %s1129_s22 }
  0x48   : > { %p1126_p11 = pnand %p1124_p12, %p1110_p3  ;;  %p1132_p9 = scmp.lt.s32.totalorder %s1130_s8, %s1123_s13 }
  0x4a   : > { %p1127_p0 = pneg %p1126_p11  ;;  %p1133_p1 = por %p1132_p9, %p1131_p5 }
  0x4c   : > { %p1134_p2 = pnand %p1133_p1, %p1127_p0 }
  0x4e   : > { %1137 = shalt.err (!%p1134_p2)
}
  0x4f   : > { %998 = dma.hbm_to_vmem [thread:$0]  (!%p1450_p13), %s1444_s18, 128, %s1446_s3, %s281_s19  }
  0x50   : > { %p1667_p7 = scmp.ne.s32.totalorder %s1659_s11, 0 }
  0x51   : > { %s1482_s15 = sand.u32 (!%p1667_p7), 1, %s1268_s25   ;;  %p1668_p3 = scmp.ne.s32.totalorder (!%p1667_p7), %s1657_s9, 0 }
  0x52   : > { %313 = sbr.rel (%p1667_p7) target bundleno = 686 (0x2ae), region = 40  ;;  %s894_s12 = sshll.u32 (!%p1667_p7), %s1482_s15, 3 }
  0x53   : > { %s316_s20 = scalar_lea.sflag (!%p1667_p7), [#allocation3], %s1482_s15  ;;  %s319_s16 = scalar_lea.vmem (!%p1667_p7), [#allocation2], %s894_s12 }
  0x59   : > { %1247 = dma.done.wait (%p1668_p3), %s316_s20, 128  }
  0x5a   : > { %1249 = vsyncadd (%p1668_p3), %s316_s20, 4294967168  ;;  %p1669_p4 = scmp.eq.s32.totalorder %s1366_s30, 0 }
  0x5c   : > { %1251 = dma.done.wait (%p1669_p4), [#allocation6], 1536   ;;  %p1670_p13 = pmov %p1669_p4 }
  0x5d   : > { %vm378_vm0 = vcmask 523264   ;;  %v377_v0 = vld [vmem:[%s319_s16] sm:$0xff]  ;;  %v1066_v7 = vld [vmem:[#allocation5] sm:$0xff]   ;;  %v1290_v8 = vmov 0.0   ;;  %v1068_v10 = vld [vmem:[#allocation5 + $0x8] sm:$0xff]   ;;  %vm1291_vm1 = vmmov 0   ;;  %v396_v18 = vlaneseq }
  0x5e   : > { %1253 = vsyncadd (%p1670_p13), [#allocation6], 4294965760  ;;  %v379_v1 = vsel %vm378_vm0, %v377_v0, 0.0  ;;  %943 = vmatprep.subr.bf16.mxu0 %v1290_v8  ;;  %955 = vmatprep.subr.bf16.mxu1 %v1290_v8  ;;  %v1067_v9 = vld [vmem:[#allocation5 + $0x20] sm:$0xff]   ;;  %v1069_v11 = vld [vmem:[#allocation5 + $0x28] sm:$0xff]   ;;  %p370_p6 = scmp.lt.s32.totalorder %s1276_s27, 1 }
  0x5f   : > { %380 = vadd.xlane.f32.xlu0 %v379_v1  ;;  %944 = vmatpush3.bf16.msra.mxu0 %v1066_v7  ;;  %v1070_v12 = vld [vmem:[#allocation5 + $0x10] sm:$0xff]   ;;  %v1072_v14 = vld [vmem:[#allocation5 + $0x18] sm:$0xff]   ;;  %v397_v20 = vshrl.u32 %v396_v18, 7  ;;  %v1074_v30 = vld [vmem:[#allocation5 + $0x40] sm:$0xff]   ;;  %s1511_s17 = sshll.u32 %s1482_s15, 2  ;;  %s667_s16 = sand.u32 1, %s1366_s30  }
  0x60   : > { %956 = vmatpush3.bf16.msra.mxu1 %v1067_v9  ;;  %945 = vmatprep.subr.bf16.mxu0 %v1290_v8  ;;  %v1071_v13 = vld [vmem:[#allocation5 + $0x30] sm:$0xff]   ;;  %v1073_v15 = vld [vmem:[#allocation5 + $0x38] sm:$0xff]   ;;  %s371_s3 = scalar_select %p370_p6, %s1276_s27, 1  ;;  %v1075_v32 = vld [vmem:[#allocation5 + $0x48] sm:$0xff]   ;;  %vm494_vm2 = vcmask 519168  }
  0x61   : > { %957 = vmatprep.subr.bf16.mxu1 %v1290_v8  ;;  %951 = vmatprep.mubr.msk.bf16.mxu0 %vm1291_vm1, %v1290_v8  ;;  %v398_v23 = vsub.s32 0, %v397_v20  ;;  %v1076_v33 = vld [vmem:[#allocation5 + $0x50] sm:$0xff]   ;;  %v1077_v34 = vld [vmem:[#allocation5 + $0x58] sm:$0xff]   ;;  %s362_s9 = scalar_lea.vmem [#allocation8], %s1511_s17  ;;  %s1543_s12 = scalar_lea.sflag [#allocation9], %s667_s16 }
  0x62   : > { %963 = vmatprep.mubr.msk.bf16.mxu1 %vm1291_vm1, %v1290_v8  ;;  %s372_s18 = scalar_lea.vmem %s1644_s1, %s371_s3  ;;  %s375_s13 = scalar_lea.vmem %s1645_s2, %s371_s3  ;;  %v900_v35 = vld [vmem:[%s1647_s4] ss:$0 sm:$0xff]  ;;  %v907_v36 = vld [vmem:[%s1647_s4 + $0x1] ss:$0 sm:$0xff] }
  0x63   : > { %946 = vmatpush3.bf16.msra.mxu0 %v1068_v10  ;;  %v393_v21 = vld [vmem:[%s372_s18] sm:$0x1]  ;;  %s1521_s3 = sshll.u32 %s1276_s27, 6  ;;  %s701_s11 = sshll.u32 %s362_s9, 4  ;;  %s1531_s11 = int_to_ptr.vmem [resolvable:$true] %s701_s11 }
  0x64   : > { %958 = vmatpush3.bf16.msra.mxu1 %v1069_v11  ;;  %947 = vmatprep.subr.bf16.mxu0 %v1290_v8  ;;  %v394_v22 = vadd.f32 1.0, %v393_v21  ;;  %v899_v27 = vld [vmem:[%s375_s13] ss:$0 sm:$0xff]  ;;  %s355_s18 = scalar_lea.vmem [#allocation7], %s1511_s17  ;;  %s1529_s27 = scalar_lea.hbm %s1649_s6, %s1521_s3 }
  0x65   : > { %959 = vmatprep.subr.bf16.mxu1 %v1290_v8  ;;  %s687_s14 = sshll.u32 %s355_s18, 4  ;;  %s1537_s8 = scalar_lea.hbm %s1648_s5, %s1521_s3  ;;  %s1539_s14 = int_to_ptr.vmem [resolvable:$true] %s687_s14 }
  0x66   : > { %v399_v24 = vrot.slane %v394_v22, %v398_v23  ;;  %s1138_s20 = scalar_lea.vmem %s1531_s11, 64  ;;  %s1292_s19 = smov [#allocation8]  }
  0x67   : > { %948 = vmatpush3.bf16.msra.mxu0 %v1070_v12  ;;  %p1139_p8 = scmp.ne.s32.totalorder %s1531_s11, %s1138_s20  ;;  %s1142_s30 = sshll.u32 %s1292_s19, 4  ;;  %s1143_s30 = int_to_ptr.vmem [resolvable:$false] %s1142_s30 }
  0x68   : > { %960 = vmatpush3.bf16.msra.mxu1 %v1071_v13  ;;  %949 = vmatprep.subr.bf16.mxu0 %v1290_v8  ;;  %s1144_s13 = scalar_lea.vmem %s1143_s30, 128  ;;  %p1145_p0 = scmp.lt.s32.totalorder %s1531_s11, %s1143_s30 }
  0x69   : > { %961 = vmatprep.subr.bf16.mxu1 %v1290_v8  ;;  %p1140_p12 = pnand %p1139_p8, %p1429_p10  ;;  %p1146_p5 = scmp.lt.s32.totalorder %s1144_s13, %s1138_s20 }
  0x6b   : > { %950 = vmatpush3.bf16.msra.mxu0 %v1072_v14  ;;  %p1141_p11 = pneg %p1140_p12  ;;  %p1147_p9 = por %p1146_p5, %p1145_p0 }
  0x6c   : > { %962 = vmatpush3.bf16.msra.mxu1 %v1073_v15  ;;  %967 = vmatprep.subr.bf16.mxu0 %v1290_v8 }
  0x6d   : > { %p1148_p1 = pnand %p1147_p9, %p1141_p11 }
  0xec   : > { %v381_v2 = vpop.xlane.xlu0 %380 }
  0xed   : > { %v383_v3 = vmul.f32 0.015625, %v381_v2 }
  0xef   : > { %v384_v4 = vsub.f32 %v377_v0, %v383_v3 }
  0xf1   : > { %v385_v5 = vmul.f32 %v384_v4, %v384_v4 }
  0xf3   : > { %v386_v6 = vsel %vm378_vm0, %v385_v5, 0.0 }
  0xf4   : > { %387 = vadd.xlane.f32.xlu0 %v386_v6 }
 0x181   : > { %v388_v16 = vpop.xlane.xlu0 %387 }
 0x182   : > { %v389_v17 = vmul.f32 0.015625, %v388_v16 }
 0x184   : > { %v390_v19 = vadd.f32 1e-06, %v389_v17 }
 0x186   : > { %1078 = vrsqrt.f32 %v390_v19 }
 0x190   : > { %v1079_v25 = vpop.eup %1078 }
 0x191   : > { %v392_v26 = vmul.f32 %v1079_v25, %v384_v4 }
 0x193   : > { %v401_v28 = vmul.f32 %v399_v24, %v392_v26 }
 0x195   : > { %v409_v29 = vadd.f32 %v899_v27, %v401_v28 }
 0x197   : > { %v410_v31 = vpack.c.bf16 %v409_v29, %v409_v29 }
 0x199   : > { %952 = vmatmul.mubr.msk.bf16.vlgmr.msra.gmra.mrb[0].mxu0 %vm378_vm0, %v410_v31  ;;  %964 = vmatmul.mubr.msk.bf16.vlgmr.msra.gmra.mrb[0].mxu1 %vm378_vm0, %v410_v31 }
 0x19a   : > { %968 = vmatpush3.bf16.msra.mxu0 %v1074_v30  ;;  %975 = vmatprep.mubr.msk.bf16.mxu0 %vm1291_vm1, %v1290_v8 }
 0x19b   : > { %969 = vmatprep.subr.bf16.mxu0 %v1290_v8 }
 0x19e   : > { %970 = vmatpush3.bf16.msra.mxu0 %v1075_v32 }
 0x19f   : > { %971 = vmatprep.subr.bf16.mxu0 %v1290_v8 }
 0x1a2   : > { %972 = vmatpush3.bf16.msra.mxu0 %v1076_v33 }
 0x1a3   : > { %973 = vmatprep.subr.bf16.mxu0 %v1290_v8 }
 0x1a6   : > { %974 = vmatpush3.bf16.msra.mxu0 %v1077_v34 }
 0x1a9   : > { %976 = vmatmul.mubr.msk.bf16.vlgmr.msra.gmra.mrb[4].mxu0 %vm378_vm0, %v410_v31 }
 0x26c   : > { %v487_v37 = vpop.f32.mrb[0].mxu0  ;;  %v571_v38 = vpop.f32.mrb[0].mxu1 }
 0x26d   : > { %v488_v39 = vadd.f32 %v900_v35, %v487_v37  ;;  %v572_v40 = vadd.f32 %v907_v36, %v571_v38  ;;  %v953_v41 = vpop.f32.mrb[1].mxu0  ;;  %v965_v42 = vpop.f32.mrb[1].mxu1 }
 0x26e   : > { %v490_v43 = vpop.f32.mrb[2].mxu0  ;;  %v574_v44 = vpop.f32.mrb[2].mxu1 }
 0x26f   : > { %v493_v45 = vpack.c.bf16 %v488_v39, %v488_v39  ;;  %v577_v46 = vpack.c.bf16 %v572_v40, %v572_v40  ;;  %v954_v47 = vpop.f32.mrb[3].mxu0  ;;  %v966_v48 = vpop.f32.mrb[3].mxu1 }
 0x271   : > { %578 = vst.msk [vmem:[%s362_s9] sm:$0xf] %vm494_vm2, %v577_v46  ;;  %495 = vst.msk [vmem:[%s355_s18] sm:$0xf] %vm494_vm2, %v493_v45 }
 0x272   : > { %1151 = shalt.err (!%p1148_p1)
}
 0x273   : > { %s1152_s16 = scalar_lea.hbm %s1529_s27, 64  ;;  %s1156_s22 = scalar_lea.hbm %s1649_s6, 128 }
 0x274   : > { %p1153_p2 = scmp.ne.s32.totalorder %s1529_s27, %s1152_s16  ;;  %p1157_p4 = scmp.lt.u32.totalorder %s1529_s27, %s1649_s6 }
 0x275   : > { %p1158_p13 = scmp.lt.u32.totalorder %s1156_s22, %s1152_s16  ;;  %p1160_p8 = scmp.lt.u32.totalorder %s1152_s16, %s1529_s27 }
 0x276   : > { %p1154_p7 = pnand %p1153_p2, %p1429_p10 }
 0x277   : > { %p1159_p6 = por %p1158_p13, %p1157_p4 }
 0x278   : > { %p1155_p3 = pneg %p1154_p7 }
 0x279   : > { %p1161_p12 = por %p1160_p8, %p1159_p6 }
 0x27b   : > { %p1162_p11 = pnand %p1161_p12, %p1155_p3 }
 0x27d   : > { %1165 = shalt.err (!%p1162_p11)
}
 0x27e   : > { %986 = dma.vmem_to_hbm [thread:$0]  (%p1429_p10), %s1531_s11, 64, %s1529_s27, %s1543_s12  }
 0x27f   : > { %s663_s20 = scalar_lea.sflag [#allocation4], %s1482_s15  ;;  %s1166_s13 = scalar_lea.vmem %s1539_s14, 64 }
 0x280   : > { %p1167_p0 = scmp.ne.s32.totalorder %s1539_s14, %s1166_s13  ;;  %s1293_s16 = smov [#allocation7]  }
 0x281   : > { %s1170_s9 = sshll.u32 %s1293_s16, 4  ;;  %s1171_s9 = int_to_ptr.vmem [resolvable:$false] %s1170_s9 }
 0x282   : > { %p1168_p5 = pnand %p1167_p0, %p1429_p10  ;;  %s1172_s18 = scalar_lea.vmem %s1171_s9, 128 }
 0x283   : > { %p1173_p1 = scmp.lt.s32.totalorder %s1539_s14, %s1171_s9  ;;  %p1174_p2 = scmp.lt.s32.totalorder %s1172_s18, %s1166_s13 }
 0x284   : > { %p1169_p9 = pneg %p1168_p5 }
 0x285   : > { %p1175_p7 = por %p1174_p2, %p1173_p1 }
 0x287   : > { %p1176_p3 = pnand %p1175_p7, %p1169_p9 }
 0x289   : > { %1179 = shalt.err (!%p1176_p3)
}
 0x28a   : > { %s1180_s15 = scalar_lea.hbm %s1537_s8, 64  ;;  %s1184_s22 = scalar_lea.hbm %s1648_s5, 128 }
 0x28b   : > { %p1181_p4 = scmp.ne.s32.totalorder %s1537_s8, %s1180_s15  ;;  %p1185_p8 = scmp.lt.u32.totalorder %s1537_s8, %s1648_s5 }
 0x28c   : > { %p1186_p12 = scmp.lt.u32.totalorder %s1184_s22, %s1180_s15  ;;  %p1188_p0 = scmp.lt.u32.totalorder %s1180_s15, %s1537_s8 }
 0x28d   : > { %p1182_p13 = pnand %p1181_p4, %p1429_p10 }
 0x28e   : > { %p1187_p11 = por %p1186_p12, %p1185_p8 }
 0x28f   : > { %p1183_p6 = pneg %p1182_p13 }
 0x290   : > { %p1189_p5 = por %p1188_p0, %p1187_p11 }
 0x292   : > { %p1190_p9 = pnand %p1189_p5, %p1183_p6 }
 0x294   : > { %1193 = shalt.err (!%p1190_p9)
}
 0x295   : > { %985 = dma.vmem_to_hbm [thread:$0]  (%p1429_p10), %s1539_s14, 64, %s1537_s8, %s663_s20   ;;  %v914_v49 = vld [vmem:[%s1647_s4 + $0x2] ss:$0 sm:$0xff]  ;;  %v654_v50 = vpop.f32.mrb[4].mxu0 }
 0x296   : > { %s369_s9 = scalar_lea.vmem [#allocation10], %s1511_s17  ;;  %v655_v51 = vadd.f32 %v914_v49, %v654_v50  ;;  %v977_v52 = vpop.f32.mrb[5].mxu0  ;;  %s1597_s27 = scalar_lea.hbm %s1650_s7, %s1521_s3 }
 0x297   : > { %s715_s18 = sshll.u32 %s369_s9, 4  ;;  %v657_v53 = vpop.f32.mrb[6].mxu0  ;;  %s1294_s17 = smov [#allocation10]   ;;  %s716_s18 = int_to_ptr.vmem [resolvable:$true] %s715_s18 }
 0x298   : > { %v660_v54 = vpack.c.bf16 %v655_v51, %v655_v51  ;;  %v978_v55 = vpop.f32.mrb[7].mxu0  ;;  %s1194_s14 = scalar_lea.vmem %s716_s18, 64  ;;  %s1198_s8 = sshll.u32 %s1294_s17, 4  ;;  %s1199_s8 = int_to_ptr.vmem [resolvable:$false] %s1198_s8 }
 0x299   : > { %p1195_p1 = scmp.ne.s32.totalorder %s716_s18, %s1194_s14  ;;  %s1200_s20 = scalar_lea.vmem %s1199_s8, 128 }
 0x29a   : > { %661 = vst.msk [vmem:[%s369_s9] sm:$0xf] %vm494_vm2, %v660_v54  ;;  %p1201_p3 = scmp.lt.s32.totalorder %s716_s18, %s1199_s8  ;;  %p1202_p4 = scmp.lt.s32.totalorder %s1200_s20, %s1194_s14 }
 0x29b   : > { %p1196_p2 = pnand %p1195_p1, %p1429_p10 }
 0x29c   : > { %p1203_p13 = por %p1202_p4, %p1201_p3 }
 0x29d   : > { %p1197_p7 = pneg %p1196_p2 }
 0x29f   : > { %p1204_p6 = pnand %p1203_p13, %p1197_p7 }
 0x2a1   : > { %1207 = shalt.err (!%p1204_p6)
}
 0x2a2   : > { %s1208_s3 = scalar_lea.hbm %s1597_s27, 64  ;;  %s1212_s30 = scalar_lea.hbm %s1650_s7, 128 }
 0x2a3   : > { %p1209_p8 = scmp.ne.s32.totalorder %s1597_s27, %s1208_s3  ;;  %p1213_p0 = scmp.lt.u32.totalorder %s1597_s27, %s1650_s7 }
 0x2a4   : > { %p1214_p5 = scmp.lt.u32.totalorder %s1212_s30, %s1208_s3  ;;  %p1216_p1 = scmp.lt.u32.totalorder %s1208_s3, %s1597_s27 }
 0x2a5   : > { %p1210_p12 = pnand %p1209_p8, %p1429_p10 }
 0x2a6   : > { %p1215_p9 = por %p1214_p5, %p1213_p0 }
 0x2a7   : > { %p1211_p11 = pneg %p1210_p12 }
 0x2a8   : > { %p1217_p2 = por %p1216_p1, %p1215_p9 }
 0x2aa   : > { %p1218_p7 = pnand %p1217_p2, %p1211_p11 }
 0x2ac   : > { %1221 = shalt.err (!%p1218_p7)
}
 0x2ad   : > { %987 = dma.vmem_to_hbm [thread:$0]  (%p1429_p10), %s716_s18, 64, %s1597_s27, %s1543_s12  }
 0x2ae PF: > { %s727_s9 = sand.u32 1, %s1264_s24   ;;  %p1671_p3 = scmp.ne.s32.totalorder %s1658_s10, 0 }
 0x2af   : > { %p1672_p4 = scmp.ge.s32.totalorder %s1284_s29, 2  ;;  %s728_s15 = scalar_lea.sflag [#allocation4], %s727_s9 }
 0x2b1   : > { %p1000_p13 = pnand %p1672_p4, %p1671_p3 }
 0x2b3   : > { %1255 = dma.done.wait (!%p1000_p13), %s728_s15, 64  }
 0x2b4   : > { %1257 = vsyncadd (!%p1000_p13), %s728_s15, 4294967232  ;;  %s1673_s11 = sadd.s32 4294967294, %s1284_s29  }
 0x2b5   : > { %s736_s14 = sand.u32 1, %s1673_s11  }
 0x2b6   : > { %s737_s17 = scalar_lea.sflag [#allocation9], %s736_s14 }
 0x2b7   : > { %1259 = dma.done.wait (!%p1000_p13), %s737_s17, 128  }
 0x2b8   : > { %1261 = vsyncadd (!%p1000_p13), %s737_s17, 4294967168  ;;  %s28_s29 = sadd.s32 1, %s1284_s29   ;;  %s1674_s21 = sld [smem:[#allocation15_spill]] }
 0x2b9   : > { %p25_p10 = scmp.ge.s32.totalorder %s28_s29, 4   ;;  %s1675_s24 = smov %s1268_s25 }
 0x2ba   : > { %s1676_s25 = smov %s1272_s26  ;;  %s1677_s26 = smov %s1438_s23 }
 0x2bb   : > { %s1678_s27 = smov %s1280_s28  ;;  %27 = sbr.rel (!%p25_p10) target bundleno = 11 (0xb), region = 131 }
 0x2be   : > { %s1679_s28 = smov %s1674_s21 }
 0x2c2   :  { %751 = vsyncpa [#allocation3], 1 }
 0x2c3   :  { %753 = vsyncpa [#allocation3 + $0x1], 1 }
 0x2c4   :  { %754 = vsyncpa [#allocation6], 1 }
 0x2c5   :  { %755 = vsyncpa [#allocation4], 1 }
 0x2c6   :  { %757 = vsyncpa [#allocation4 + $0x1], 1 }
 0x2c7   :  { %758 = vsyncpa [#allocation9], 1 }
 0x2c8   :  { %760 = vsyncpa [#allocation9 + $0x1], 1 }

// kernel: tpu_custom_call.1
= control target key start
LH: loop header
LB: loop body
LE: loop exit
PB: predicated region body
PF: predicated region fallthrough
CT: control target
= control target key end

     0   :  { %s1643_s0 = inlined_call_operand.hbm [shape: f32[2,8,64], index: 0, kind: input, shape index: {}]   ;;  %s1644_s1 = inlined_call_operand.vmem [shape: f32[2,1,64], index: 1, kind: input, shape index: {}]   ;;  %s1645_s2 = inlined_call_operand.vmem [shape: f32[2,1,64], index: 2, kind: input, shape index: {}]   ;;  %s1646_s3 = inlined_call_operand.hbm [shape: bf16[3,64,64], index: 3, kind: input, shape index: {}]   ;;  %s1647_s4 = inlined_call_operand.vmem [shape: f32[3,1,64], index: 4, kind: input, shape index: {}]   ;;  %s1648_s5 = inlined_call_operand.hbm [shape: bf16[2,8,64], index: 5, kind: output, shape index: {0}]   ;;  %s1649_s6 = inlined_call_operand.hbm [shape: bf16[2,8,64], index: 6, kind: output, shape index: {1}]   ;;  %s1650_s7 = inlined_call_operand.hbm [shape: bf16[2,8,64], index: 7, kind: output, shape index: {2}]  }
   0x1   :  { %1656 = sst [smem:[#allocation16_spill]] %s1646_s3 }
   0x2   :  { %13 = vsyncpa [#allocation3], 0 }
   0x3   :  { %15 = vsyncpa [#allocation3 + $0x1], 0 }
   0x4   :  { %16 = vsyncpa [#allocation6], 0 }
   0x5   :  { %17 = vsyncpa [#allocation4], 0 }
   0x6   :  { %19 = vsyncpa [#allocation4 + $0x1], 0 }
   0x7   :  { %20 = vsyncpa [#allocation9], 0 }
   0x8   :  { %22 = vsyncpa [#allocation9 + $0x1], 0  ;;  %s1335_s24 = smov 0   ;;  %s1337_s25 = smov 0  }
   0x9   :  { %s1339_s26 = smov 0   ;;  %s1341_s27 = smov 0  }
   0xa   :  { %s1343_s28 = smov 0   ;;  %s1345_s29 = smov 0  }
   0xb LB: > { %s1366_s30 = sadd.s32 4294967295, %s1284_s29   ;;  %s1654_s8 = sadd.s32 4294967294, %s1284_s29   ;;  %s1284_s29 = sphi %s1345_s29, %s28_s29   ;;  %s1280_s28 = sphi %s1343_s28, %s1679_s28   ;;  %s1276_s27 = sphi %s1341_s27, %s1678_s27   ;;  %s1272_s26 = sphi %s1339_s26, %s1677_s26   ;;  %s1268_s25 = sphi %s1337_s25, %s1676_s25   ;;  %s1264_s24 = sphi %s1335_s24, %s1675_s24  }
   0xc   : > { %p62_p0 = scmp.ne.s32.totalorder %s1268_s25, %s1264_s24  ;;  %p1651_p1 = scmp.eq.s32.totalorder %s1366_s30, 0 }
   0xd   : > { %p188_p3 = scmp.eq.s32.totalorder %s1654_s8, 1  ;;  %p888_p5 = scmp.ge.s32.totalorder %s1284_s29, 1 }
   0xe   : > { %p1377_p4 = por %p1651_p1, %p62_p0  ;;  %p251_p7 = scmp.lt.s32.totalorder %s1284_s29, 3 }
   0xf   : > { %p1382_p6 = por %p188_p3, %p62_p0  ;;  %s1286_s12 = smov [#allocation5]  }
  0x10   : > { %s1657_s9 = scalar_select %p1377_p4, 1, 0 }
  0x11   : > { %s1658_s10 = scalar_select %p1382_p6, 1, 0 }
  0x12   : > { %p1387_p8 = pnand %p888_p5, %p251_p7  ;;  %s263_s13 = sshll.u32 %s1286_s12, 4  ;;  %s264_s13 = int_to_ptr.vmem [resolvable:$true] %s263_s13 }
  0x13   : > { %s40_s15 = sadd.s32 1, %s1280_s28  ;;  %s1661_s3 = sld [smem:[#allocation16_spill]] }
  0x14   : > { %s1659_s11 = scalar_select %p1387_p8, 1, 0 }
  0x15   : > { %p991_p9 = pneg %p1387_p8 }
  0x17   : > { %p1396_p11 = pnand %p991_p9, %p1651_p1 }
  0x19   : > { %s1080_s18 = scalar_lea.hbm %s1661_s3, 1536  ;;  %p1082_p13 = pneg %p1396_p11 }
  0x1a   : > { %p1081_p12 = scmp.ne.s32.totalorder %s1661_s3, %s1080_s18  ;;  %p1087_p5 = scmp.lt.u32.totalorder %s1080_s18, %s1661_s3 }
  0x1c   : > { %p1083_p0 = pnand %p1082_p13, %p1081_p12 }
  0x1e   : > { %p1084_p3 = pneg %p1083_p0 }
  0x20   : > { %p1089_p7 = pnand %p1087_p5, %p1084_p3 }
  0x22   : > { %1092 = shalt.err (!%p1089_p7)
}
  0x23   : > { %s1093_s23 = scalar_lea.vmem %s264_s13, 1536  ;;  %p1101_p2 = scmp.lt.s32.totalorder %s264_s13, %s264_s13 }
  0x24   : > { %p1094_p9 = scmp.ne.s32.totalorder %s264_s13, %s1093_s23  ;;  %p1102_p6 = scmp.lt.s32.totalorder %s1093_s23, %s1093_s23 }
  0x26   : > { %p1096_p10 = pnand %p1094_p9, %p1082_p13  ;;  %p1103_p4 = por %p1102_p6, %p1101_p2 }
  0x28   : > { %p1097_p1 = pneg %p1096_p10 }
  0x2a   : > { %p1104_p8 = pnand %p1103_p4, %p1097_p1 }
  0x2c   : > { %1107 = shalt.err (!%p1104_p8)
}
  0x2d   : > { %s1287_s12 = smov 64   ;;  %s1288_s16 = smov 4  }
  0x2e   : > { %994 = dma.hbm_to_vmem [thread:$0]  (!%p1396_p11), %s1661_s3, 1536, %s264_s13, [#allocation6], %s1287_s12, %s1287_s12, %s1288_s16  }
  0x2f   : > { %p42_p1 = scmp.ge.s32.totalorder %s40_s15, 2  ;;  %s49_s19 = sadd.s32 1, %s1272_s26 }
  0x30   : > { %p56_p2 = scmp.ne.s32.totalorder %s1272_s26, %s1268_s25  ;;  %p57_p4 = scmp.eq.s32.totalorder %s1284_s29, 0 }
  0x31   : > { %s1681_s15 = smov (%p42_p1, %s40_s15), 0  ;;  %p1664_p8 = scmp.eq.s32.totalorder %s1366_s30, 1 }
  0x32   : > { %1662 = sst [smem:[#allocation15_spill]] %s1681_s15  ;;  %p1423_p6 = por %p57_p4, %p56_p2 }
  0x33   : > { %p1429_p10 = por %p1664_p8, %p56_p2  ;;  %s44_s14 = ssub.s32 %s1280_s28, %s1681_s15 }
  0x34   : > { %p1010_p12 = scmp.lt.s32.totalorder %s1284_s29, 2  ;;  %p47_p11 = scmp.eq.s32.totalorder %s44_s14, 0 }
  0x35   : > { %s280_s13 = sand.u32 1, %s1272_s26   ;;  %s892_s12 = sshll.u32 %s1280_s28, 7 }
  0x36   : > { %s891_s22 = sshll.u32 %s280_s13, 3  ;;  %s1444_s18 = scalar_lea.hbm %s1643_s0, %s892_s12 }
  0x37   : > { %s1438_s23 = scalar_select %p47_p11, %s1272_s26, %s49_s19  }
  0x38   : > { %s284_s8 = scalar_lea.vmem [#allocation2], %s891_s22  ;;  %p1450_p13 = pnand %p1010_p12, %p1423_p6 }
  0x39   : > { %s292_s3 = sshll.u32 %s284_s8, 4  ;;  %s281_s19 = scalar_lea.sflag [#allocation3], %s280_s13  ;;  %s1446_s3 = int_to_ptr.vmem [resolvable:$true] %s292_s3 }
  0x3a   : > { %s1108_s15 = scalar_lea.hbm %s1444_s18, 128  ;;  %p1110_p3 = pneg %p1450_p13 }
  0x3b   : > { %p1109_p0 = scmp.ne.s32.totalorder %s1444_s18, %s1108_s15  ;;  %s1113_s12 = scalar_lea.hbm %s1643_s0, 256 }
  0x3c   : > { %p1114_p9 = scmp.lt.u32.totalorder %s1444_s18, %s1643_s0  ;;  %p1115_p1 = scmp.lt.u32.totalorder %s1113_s12, %s1108_s15 }
  0x3d   : > { %p1111_p5 = pnand %p1110_p3, %p1109_p0  ;;  %p1117_p4 = scmp.lt.u32.totalorder %s1108_s15, %s1444_s18 }
  0x3e   : > { %p1116_p2 = por %p1115_p1, %p1114_p9 }
  0x3f   : > { %p1112_p7 = pneg %p1111_p5 }
  0x40   : > { %p1118_p6 = por %p1117_p4, %p1116_p2 }
  0x42   : > { %p1119_p8 = pnand %p1118_p6, %p1112_p7 }
  0x44   : > { %1122 = shalt.err (!%p1119_p8)
}
  0x45   : > { %s1123_s13 = scalar_lea.vmem %s1446_s3, 128  ;;  %s1289_s17 = smov [#allocation2]  }
  0x46   : > { %p1124_p12 = scmp.ne.s32.totalorder %s1446_s3, %s1123_s13  ;;  %s1128_s22 = sshll.u32 %s1289_s17, 4  ;;  %s1129_s22 = int_to_ptr.vmem [resolvable:$false] %s1128_s22 }
  0x47   : > { %s1130_s8 = scalar_lea.vmem %s1129_s22, 256  ;;  %p1131_p5 = scmp.lt.s32.totalorder %s1446_s3, %s1129_s22 }
  0x48   : > { %p1126_p11 = pnand %p1124_p12, %p1110_p3  ;;  %p1132_p9 = scmp.lt.s32.totalorder %s1130_s8, %s1123_s13 }
  0x4a   : > { %p1127_p0 = pneg %p1126_p11  ;;  %p1133_p1 = por %p1132_p9, %p1131_p5 }
  0x4c   : > { %p1134_p2 = pnand %p1133_p1, %p1127_p0 }
  0x4e   : > { %1137 = shalt.err (!%p1134_p2)
}
  0x4f   : > { %998 = dma.hbm_to_vmem [thread:$0]  (!%p1450_p13), %s1444_s18, 128, %s1446_s3, %s281_s19  }
  0x50   : > { %p1667_p7 = scmp.ne.s32.totalorder %s1659_s11, 0 }
  0x51   : > { %s1482_s15 = sand.u32 (!%p1667_p7), 1, %s1268_s25   ;;  %p1668_p3 = scmp.ne.s32.totalorder (!%p1667_p7), %s1657_s9, 0 }
  0x52   : > { %313 = sbr.rel (%p1667_p7) target bundleno = 686 (0x2ae), region = 40  ;;  %s894_s12 = sshll.u32 (!%p1667_p7), %s1482_s15, 3 }
  0x53   : > { %s316_s20 = scalar_lea.sflag (!%p1667_p7), [#allocation3], %s1482_s15  ;;  %s319_s16 = scalar_lea.vmem (!%p1667_p7), [#allocation2], %s894_s12 }
  0x59   : > { %1247 = dma.done.wait (%p1668_p3), %s316_s20, 128  }
  0x5a   : > { %1249 = vsyncadd (%p1668_p3), %s316_s20, 4294967168  ;;  %p1669_p4 = scmp.eq.s32.totalorder %s1366_s30, 0 }
  0x5c   : > { %1251 = dma.done.wait (%p1669_p4), [#allocation6], 1536   ;;  %p1670_p13 = pmov %p1669_p4 }
  0x5d   : > { %vm378_vm0 = vcmask 523264   ;;  %v377_v0 = vld [vmem:[%s319_s16] sm:$0xff]  ;;  %v1066_v7 = vld [vmem:[#allocation5] sm:$0xff]   ;;  %v1290_v8 = vmov 0.0   ;;  %v1068_v10 = vld [vmem:[#allocation5 + $0x8] sm:$0xff]   ;;  %vm1291_vm1 = vmmov 0   ;;  %v396_v18 = vlaneseq }
  0x5e   : > { %1253 = vsyncadd (%p1670_p13), [#allocation6], 4294965760  ;;  %v379_v1 = vsel %vm378_vm0, %v377_v0, 0.0  ;;  %943 = vmatprep.subr.bf16.mxu0 %v1290_v8  ;;  %955 = vmatprep.subr.bf16.mxu1 %v1290_v8  ;;  %v1067_v9 = vld [vmem:[#allocation5 + $0x20] sm:$0xff]   ;;  %v1069_v11 = vld [vmem:[#allocation5 + $0x28] sm:$0xff]   ;;  %p370_p6 = scmp.lt.s32.totalorder %s1276_s27, 1 }
  0x5f   : > { %380 = vadd.xlane.f32.xlu0 %v379_v1  ;;  %944 = vmatpush3.bf16.msra.mxu0 %v1066_v7  ;;  %v1070_v12 = vld [vmem:[#allocation5 + $0x10] sm:$0xff]   ;;  %v1072_v14 = vld [vmem:[#allocation5 + $0x18] sm:$0xff]   ;;  %v397_v20 = vshrl.u32 %v396_v18, 7  ;;  %v1074_v30 = vld [vmem:[#allocation5 + $0x40] sm:$0xff]   ;;  %s1511_s17 = sshll.u32 %s1482_s15, 2  ;;  %s667_s16 = sand.u32 1, %s1366_s30  }
  0x60   : > { %956 = vmatpush3.bf16.msra.mxu1 %v1067_v9  ;;  %945 = vmatprep.subr.bf16.mxu0 %v1290_v8  ;;  %v1071_v13 = vld [vmem:[#allocation5 + $0x30] sm:$0xff]   ;;  %v1073_v15 = vld [vmem:[#allocation5 + $0x38] sm:$0xff]   ;;  %s371_s3 = scalar_select %p370_p6, %s1276_s27, 1  ;;  %v1075_v32 = vld [vmem:[#allocation5 + $0x48] sm:$0xff]   ;;  %vm494_vm2 = vcmask 519168  }
  0x61   : > { %957 = vmatprep.subr.bf16.mxu1 %v1290_v8  ;;  %951 = vmatprep.mubr.msk.bf16.mxu0 %vm1291_vm1, %v1290_v8  ;;  %v398_v23 = vsub.s32 0, %v397_v20  ;;  %v1076_v33 = vld [vmem:[#allocation5 + $0x50] sm:$0xff]   ;;  %v1077_v34 = vld [vmem:[#allocation5 + $0x58] sm:$0xff]   ;;  %s362_s9 = scalar_lea.vmem [#allocation8], %s1511_s17  ;;  %s1543_s12 = scalar_lea.sflag [#allocation9], %s667_s16 }
  0x62   : > { %963 = vmatprep.mubr.msk.bf16.mxu1 %vm1291_vm1, %v1290_v8  ;;  %s372_s18 = scalar_lea.vmem %s1644_s1, %s371_s3  ;;  %s375_s13 = scalar_lea.vmem %s1645_s2, %s371_s3  ;;  %v900_v35 = vld [vmem:[%s1647_s4] ss:$0 sm:$0xff]  ;;  %v907_v36 = vld [vmem:[%s1647_s4 + $0x1] ss:$0 sm:$0xff] }
  0x63   : > { %946 = vmatpush3.bf16.msra.mxu0 %v1068_v10  ;;  %v393_v21 = vld [vmem:[%s372_s18] sm:$0x1]  ;;  %s1521_s3 = sshll.u32 %s1276_s27, 6  ;;  %s701_s11 = sshll.u32 %s362_s9, 4  ;;  %s1531_s11 = int_to_ptr.vmem [resolvable:$true] %s701_s11 }
  0x64   : > { %958 = vmatpush3.bf16.msra.mxu1 %v1069_v11  ;;  %947 = vmatprep.subr.bf16.mxu0 %v1290_v8  ;;  %v394_v22 = vadd.f32 1.0, %v393_v21  ;;  %v899_v27 = vld [vmem:[%s375_s13] ss:$0 sm:$0xff]  ;;  %s355_s18 = scalar_lea.vmem [#allocation7], %s1511_s17  ;;  %s1529_s27 = scalar_lea.hbm %s1649_s6, %s1521_s3 }
  0x65   : > { %959 = vmatprep.subr.bf16.mxu1 %v1290_v8  ;;  %s687_s14 = sshll.u32 %s355_s18, 4  ;;  %s1537_s8 = scalar_lea.hbm %s1648_s5, %s1521_s3  ;;  %s1539_s14 = int_to_ptr.vmem [resolvable:$true] %s687_s14 }
  0x66   : > { %v399_v24 = vrot.slane %v394_v22, %v398_v23  ;;  %s1138_s20 = scalar_lea.vmem %s1531_s11, 64  ;;  %s1292_s19 = smov [#allocation8]  }
  0x67   : > { %948 = vmatpush3.bf16.msra.mxu0 %v1070_v12  ;;  %p1139_p8 = scmp.ne.s32.totalorder %s1531_s11, %s1138_s20  ;;  %s1142_s30 = sshll.u32 %s1292_s19, 4  ;;  %s1143_s30 = int_to_ptr.vmem [resolvable:$false] %s1142_s30 }
  0x68   : > { %960 = vmatpush3.bf16.msra.mxu1 %v1071_v13  ;;  %949 = vmatprep.subr.bf16.mxu0 %v1290_v8  ;;  %s1144_s13 = scalar_lea.vmem %s1143_s30, 128  ;;  %p1145_p0 = scmp.lt.s32.totalorder %s1531_s11, %s1143_s30 }
  0x69   : > { %961 = vmatprep.subr.bf16.mxu1 %v1290_v8  ;;  %p1140_p12 = pnand %p1139_p8, %p1429_p10  ;;  %p1146_p5 = scmp.lt.s32.totalorder %s1144_s13, %s1138_s20 }
  0x6b   : > { %950 = vmatpush3.bf16.msra.mxu0 %v1072_v14  ;;  %p1141_p11 = pneg %p1140_p12  ;;  %p1147_p9 = por %p1146_p5, %p1145_p0 }
  0x6c   : > { %962 = vmatpush3.bf16.msra.mxu1 %v1073_v15  ;;  %967 = vmatprep.subr.bf16.mxu0 %v1290_v8 }
  0x6d   : > { %p1148_p1 = pnand %p1147_p9, %p1141_p11 }
  0xec   : > { %v381_v2 = vpop.xlane.xlu0 %380 }
  0xed   : > { %v383_v3 = vmul.f32 0.015625, %v381_v2 }
  0xef   : > { %v384_v4 = vsub.f32 %v377_v0, %v383_v3 }
  0xf1   : > { %v385_v5 = vmul.f32 %v384_v4, %v384_v4 }
  0xf3   : > { %v386_v6 = vsel %vm378_vm0, %v385_v5, 0.0 }
  0xf4   : > { %387 = vadd.xlane.f32.xlu0 %v386_v6 }
 0x181   : > { %v388_v16 = vpop.xlane.xlu0 %387 }
 0x182   : > { %v389_v17 = vmul.f32 0.015625, %v388_v16 }
 0x184   : > { %v390_v19 = vadd.f32 1e-06, %v389_v17 }
 0x186   : > { %1078 = vrsqrt.f32 %v390_v19 }
 0x190   : > { %v1079_v25 = vpop.eup %1078 }
 0x191   : > { %v392_v26 = vmul.f32 %v1079_v25, %v384_v4 }
 0x193   : > { %v401_v28 = vmul.f32 %v399_v24, %v392_v26 }
 0x195   : > { %v409_v29 = vadd.f32 %v899_v27, %v401_v28 }
 0x197   : > { %v410_v31 = vpack.c.bf16 %v409_v29, %v409_v29 }
 0x199   : > { %952 = vmatmul.mubr.msk.bf16.vlgmr.msra.gmra.mrb[0].mxu0 %vm378_vm0, %v410_v31  ;;  %964 = vmatmul.mubr.msk.bf16.vlgmr.msra.gmra.mrb[0].mxu1 %vm378_vm0, %v410_v31 }
 0x19a   : > { %968 = vmatpush3.bf16.msra.mxu0 %v1074_v30  ;;  %975 = vmatprep.mubr.msk.bf16.mxu0 %vm1291_vm1, %v1290_v8 }
 0x19b   : > { %969 = vmatprep.subr.bf16.mxu0 %v1290_v8 }
 0x19e   : > { %970 = vmatpush3.bf16.msra.mxu0 %v1075_v32 }
 0x19f   : > { %971 = vmatprep.subr.bf16.mxu0 %v1290_v8 }
 0x1a2   : > { %972 = vmatpush3.bf16.msra.mxu0 %v1076_v33 }
 0x1a3   : > { %973 = vmatprep.subr.bf16.mxu0 %v1290_v8 }
 0x1a6   : > { %974 = vmatpush3.bf16.msra.mxu0 %v1077_v34 }
 0x1a9   : > { %976 = vmatmul.mubr.msk.bf16.vlgmr.msra.gmra.mrb[4].mxu0 %vm378_vm0, %v410_v31 }
 0x26c   : > { %v487_v37 = vpop.f32.mrb[0].mxu0  ;;  %v571_v38 = vpop.f32.mrb[0].mxu1 }
 0x26d   : > { %v488_v39 = vadd.f32 %v900_v35, %v487_v37  ;;  %v572_v40 = vadd.f32 %v907_v36, %v571_v38  ;;  %v953_v41 = vpop.f32.mrb[1].mxu0  ;;  %v965_v42 = vpop.f32.mrb[1].mxu1 }
 0x26e   : > { %v490_v43 = vpop.f32.mrb[2].mxu0  ;;  %v574_v44 = vpop.f32.mrb[2].mxu1 }
 0x26f   : > { %v493_v45 = vpack.c.bf16 %v488_v39, %v488_v39  ;;  %v577_v46 = vpack.c.bf16 %v572_v40, %v572_v40  ;;  %v954_v47 = vpop.f32.mrb[3].mxu0  ;;  %v966_v48 = vpop.f32.mrb[3].mxu1 }
 0x271   : > { %578 = vst.msk [vmem:[%s362_s9] sm:$0xf] %vm494_vm2, %v577_v46  ;;  %495 = vst.msk [vmem:[%s355_s18] sm:$0xf] %vm494_vm2, %v493_v45 }
 0x272   : > { %1151 = shalt.err (!%p1148_p1)
}
 0x273   : > { %s1152_s16 = scalar_lea.hbm %s1529_s27, 64  ;;  %s1156_s22 = scalar_lea.hbm %s1649_s6, 128 }
 0x274   : > { %p1153_p2 = scmp.ne.s32.totalorder %s1529_s27, %s1152_s16  ;;  %p1157_p4 = scmp.lt.u32.totalorder %s1529_s27, %s1649_s6 }
 0x275   : > { %p1158_p13 = scmp.lt.u32.totalorder %s1156_s22, %s1152_s16  ;;  %p1160_p8 = scmp.lt.u32.totalorder %s1152_s16, %s1529_s27 }
 0x276   : > { %p1154_p7 = pnand %p1153_p2, %p1429_p10 }
 0x277   : > { %p1159_p6 = por %p1158_p13, %p1157_p4 }
 0x278   : > { %p1155_p3 = pneg %p1154_p7 }
 0x279   : > { %p1161_p12 = por %p1160_p8, %p1159_p6 }
 0x27b   : > { %p1162_p11 = pnand %p1161_p12, %p1155_p3 }
 0x27d   : > { %1165 = shalt.err (!%p1162_p11)
}
 0x27e   : > { %986 = dma.vmem_to_hbm [thread:$0]  (%p1429_p10), %s1531_s11, 64, %s1529_s27, %s1543_s12  }
 0x27f   : > { %s663_s20 = scalar_lea.sflag [#allocation4], %s1482_s15  ;;  %s1166_s13 = scalar_lea.vmem %s1539_s14, 64 }
 0x280   : > { %p1167_p0 = scmp.ne.s32.totalorder %s1539_s14, %s1166_s13  ;;  %s1293_s16 = smov [#allocation7]  }
 0x281   : > { %s1170_s9 = sshll.u32 %s1293_s16, 4  ;;  %s1171_s9 = int_to_ptr.vmem [resolvable:$false] %s1170_s9 }
 0x282   : > { %p1168_p5 = pnand %p1167_p0, %p1429_p10  ;;  %s1172_s18 = scalar_lea.vmem %s1171_s9, 128 }
 0x283   : > { %p1173_p1 = scmp.lt.s32.totalorder %s1539_s14, %s1171_s9  ;;  %p1174_p2 = scmp.lt.s32.totalorder %s1172_s18, %s1166_s13 }
 0x284   : > { %p1169_p9 = pneg %p1168_p5 }
 0x285   : > { %p1175_p7 = por %p1174_p2, %p1173_p1 }
 0x287   : > { %p1176_p3 = pnand %p1175_p7, %p1169_p9 }
 0x289   : > { %1179 = shalt.err (!%p1176_p3)
}
 0x28a   : > { %s1180_s15 = scalar_lea.hbm %s1537_s8, 64  ;;  %s1184_s22 = scalar_lea.hbm %s1648_s5, 128 }
 0x28b   : > { %p1181_p4 = scmp.ne.s32.totalorder %s1537_s8, %s1180_s15  ;;  %p1185_p8 = scmp.lt.u32.totalorder %s1537_s8, %s1648_s5 }
 0x28c   : > { %p1186_p12 = scmp.lt.u32.totalorder %s1184_s22, %s1180_s15  ;;  %p1188_p0 = scmp.lt.u32.totalorder %s1180_s15, %s1537_s8 }
 0x28d   : > { %p1182_p13 = pnand %p1181_p4, %p1429_p10 }
 0x28e   : > { %p1187_p11 = por %p1186_p12, %p1185_p8 }
 0x28f   : > { %p1183_p6 = pneg %p1182_p13 }
 0x290   : > { %p1189_p5 = por %p1188_p0, %p1187_p11 }
 0x292   : > { %p1190_p9 = pnand %p1189_p5, %p1183_p6 }
 0x294   : > { %1193 = shalt.err (!%p1190_p9)
}
 0x295   : > { %985 = dma.vmem_to_hbm [thread:$0]  (%p1429_p10), %s1539_s14, 64, %s1537_s8, %s663_s20   ;;  %v914_v49 = vld [vmem:[%s1647_s4 + $0x2] ss:$0 sm:$0xff]  ;;  %v654_v50 = vpop.f32.mrb[4].mxu0 }
 0x296   : > { %s369_s9 = scalar_lea.vmem [#allocation10], %s1511_s17  ;;  %v655_v51 = vadd.f32 %v914_v49, %v654_v50  ;;  %v977_v52 = vpop.f32.mrb[5].mxu0  ;;  %s1597_s27 = scalar_lea.hbm %s1650_s7, %s1521_s3 }
 0x297   : > { %s715_s18 = sshll.u32 %s369_s9, 4  ;;  %v657_v53 = vpop.f32.mrb[6].mxu0  ;;  %s1294_s17 = smov [#allocation10]   ;;  %s716_s18 = int_to_ptr.vmem [resolvable:$true] %s715_s18 }
 0x298   : > { %v660_v54 = vpack.c.bf16 %v655_v51, %v655_v51  ;;  %v978_v55 = vpop.f32.mrb[7].mxu0  ;;  %s1194_s14 = scalar_lea.vmem %s716_s18, 64  ;;  %s1198_s8 = sshll.u32 %s1294_s17, 4  ;;  %s1199_s8 = int_to_ptr.vmem [resolvable:$false] %s1198_s8 }
 0x299   : > { %p1195_p1 = scmp.ne.s32.totalorder %s716_s18, %s1194_s14  ;;  %s1200_s20 = scalar_lea.vmem %s1199_s8, 128 }
 0x29a   : > { %661 = vst.msk [vmem:[%s369_s9] sm:$0xf] %vm494_vm2, %v660_v54  ;;  %p1201_p3 = scmp.lt.s32.totalorder %s716_s18, %s1199_s8  ;;  %p1202_p4 = scmp.lt.s32.totalorder %s1200_s20, %s1194_s14 }
 0x29b   : > { %p1196_p2 = pnand %p1195_p1, %p1429_p10 }
 0x29c   : > { %p1203_p13 = por %p1202_p4, %p1201_p3 }
 0x29d   : > { %p1197_p7 = pneg %p1196_p2 }
 0x29f   : > { %p1204_p6 = pnand %p1203_p13, %p1197_p7 }
 0x2a1   : > { %1207 = shalt.err (!%p1204_p6)
}
 0x2a2   : > { %s1208_s3 = scalar_lea.hbm %s1597_s27, 64  ;;  %s1212_s30 = scalar_lea.hbm %s1650_s7, 128 }
 0x2a3   : > { %p1209_p8 = scmp.ne.s32.totalorder %s1597_s27, %s1208_s3  ;;  %p1213_p0 = scmp.lt.u32.totalorder %s1597_s27, %s1650_s7 }
 0x2a4   : > { %p1214_p5 = scmp.lt.u32.totalorder %s1212_s30, %s1208_s3  ;;  %p1216_p1 = scmp.lt.u32.totalorder %s1208_s3, %s1597_s27 }
 0x2a5   : > { %p1210_p12 = pnand %p1209_p8, %p1429_p10 }
 0x2a6   : > { %p1215_p9 = por %p1214_p5, %p1213_p0 }
 0x2a7   : > { %p1211_p11 = pneg %p1210_p12 }
 0x2a8   : > { %p1217_p2 = por %p1216_p1, %p1215_p9 }
 0x2aa   : > { %p1218_p7 = pnand %p1217_p2, %p1211_p11 }
 0x2ac   : > { %1221 = shalt.err (!%p1218_p7)
}
 0x2ad   : > { %987 = dma.vmem_to_hbm [thread:$0]  (%p1429_p10), %s716_s18, 64, %s1597_s27, %s1543_s12  }
 0x2ae PF: > { %s727_s9 = sand.u32 1, %s1264_s24   ;;  %p1671_p3 = scmp.ne.s32.totalorder %s1658_s10, 0 }
 0x2af   : > { %p1672_p4 = scmp.ge.s32.totalorder %s1284_s29, 2  ;;  %s728_s15 = scalar_lea.sflag [#allocation4], %s727_s9 }
 0x2b1   : > { %p1000_p13 = pnand %p1672_p4, %p1671_p3 }
 0x2b3   : > { %1255 = dma.done.wait (!%p1000_p13), %s728_s15, 64  }
 0x2b4   : > { %1257 = vsyncadd (!%p1000_p13), %s728_s15, 4294967232  ;;  %s1673_s11 = sadd.s32 4294967294, %s1284_s29  }
 0x2b5   : > { %s736_s14 = sand.u32 1, %s1673_s11  }
 0x2b6   : > { %s737_s17 = scalar_lea.sflag [#allocation9], %s736_s14 }
 0x2b7   : > { %1259 = dma.done.wait (!%p1000_p13), %s737_s17, 128  }
 0x2b8   : > { %1261 = vsyncadd (!%p1000_p13), %s737_s17, 4294967168  ;;  %s28_s29 = sadd.s32 1, %s1284_s29   ;;  %s1674_s21 = sld [smem:[#allocation15_spill]] }
 0x2b9   : > { %p25_p10 = scmp.ge.s32.totalorder %s28_s29, 4   ;;  %s1675_s24 = smov %s1268_s25 }
 0x2ba   : > { %s1676_s25 = smov %s1272_s26  ;;  %s1677_s26 = smov %s1438_s23 }
 0x2bb   : > { %s1678_s27 = smov %s1280_s28  ;;  %27 = sbr.rel (!%p25_p10) target bundleno = 11 (0xb), region = 131 }
 0x2be   : > { %s1679_s28 = smov %s1674_s21 }
 0x2c2   :  { %751 = vsyncpa [#allocation3], 1 }
 0x2c3   :  { %753 = vsyncpa [#allocation3 + $0x1], 1 }
 0x2c4   :  { %754 = vsyncpa [#allocation6], 1 }
 0x2c5   :  { %755 = vsyncpa [#allocation4], 1 }
 0x2c6   :  { %757 = vsyncpa [#allocation4 + $0x1], 1 }
 0x2c7   :  { %758 = vsyncpa [#allocation9], 1 }
 0x2c8   :  { %760 = vsyncpa [#allocation9 + $0x1], 1 }

</bundles_post_ra>
